<compile_context>
chip_gen: v7x
topology: tpu7x:2x2x1
jax: 0.10.0
libtpu: 0.0.40
codegen_flags: <defaults>
</compile_context>

<pallas_src>
import numpy as np
import jax
import jax.numpy as jnp
from jax.experimental import pallas as pl
from jax.experimental.pallas import tpu as pltpu

N_HEADS = 4
EPS = 1e-6
NEG_INF = -1e9


def _layer_norm(x, gamma, beta):
    mu = jnp.mean(x, axis=-1, keepdims=True)
    var = jnp.mean(jnp.square(x - mu), axis=-1, keepdims=True)
    return (x - mu) * jax.lax.rsqrt(var + EPS) * gamma + beta


def _softmax(s):
    m = jnp.max(s, axis=-1, keepdims=True)
    e = jnp.exp(s - m)
    return e / jnp.sum(e, axis=-1, keepdims=True)


def _attending_layer_kernel(x_ref, ed_ref, gd_ref, mask_ref,
                            lng_ref, lnb_ref, wd_ref, bd_ref,
                            wqkv_ref, bqkv_ref, wo_ref, bo_ref,
                            w1_ref, b1_ref, w2_ref, b2_ref,
                            o_ref):
    f32 = jnp.float32
    x = x_ref[...]                                   # (S, D)
    mask = mask_ref[...]                             # (1, S)
    mask_bias = jnp.where(mask > 0.0, 0.0, NEG_INF)  # masks key positions

    dists = (ed_ref[...], gd_ref[...])               # each (S, S)

    # --- sublayers 0 & 1: euclidean- / graph-distance attention -------------
    for li in range(2):
        xn = _layer_norm(x, lng_ref[li], lnb_ref[li])
        p = _softmax(-dists[li] + mask_bias)                              # (S, S)
        v = jnp.dot(xn, wd_ref[li, 0], preferred_element_type=f32) + bd_ref[li, 0]
        att = jnp.dot(p, v, preferred_element_type=f32)                   # (S, D)
        x = x + jnp.dot(att, wd_ref[li, 1], preferred_element_type=f32) + bd_ref[li, 1]

    # --- sublayer 2: multi-head self-attention (fused QKV projection) --------
    xn = _layer_norm(x, lng_ref[2], lnb_ref[2])
    qkv = jnp.dot(xn, wqkv_ref[...], preferred_element_type=f32) + bqkv_ref[...]
    wo = wo_ref[...]                                 # (D, D)
    d_model = x.shape[-1]
    d_head = d_model // N_HEADS
    scale = 1.0 / float(np.sqrt(d_head))
    att_out = jnp.zeros_like(x)
    for h in range(N_HEADS):
        lo, hi = h * d_head, (h + 1) * d_head
        qh = qkv[:, lo:hi]
        kh = qkv[:, d_model + lo:d_model + hi]
        vh = qkv[:, 2 * d_model + lo:2 * d_model + hi]
        s = jax.lax.dot_general(qh, kh, (((1,), (1,)), ((), ())),
                                preferred_element_type=f32) * scale + mask_bias
        ph = _softmax(s)
        ah = jnp.dot(ph, vh, preferred_element_type=f32)                  # (S, d_head)
        # concat(heads) @ Wo == sum_h head_h @ Wo[h*dk:(h+1)*dk, :]
        att_out = att_out + jnp.dot(ah, wo[lo:hi, :], preferred_element_type=f32)
    x = x + att_out + bo_ref[...]

    # --- sublayer 3: position-wise feed-forward ------------------------------
    xn = _layer_norm(x, lng_ref[3], lnb_ref[3])
    h1 = jnp.maximum(jnp.dot(xn, w1_ref[...], preferred_element_type=f32)
                     + b1_ref[...], 0.0)
    x = x + jnp.dot(h1, w2_ref[...], preferred_element_type=f32) + b2_ref[...]

    o_ref[...] = x


def attending_layer(x, eucl_dists, graph_dists, mask, params):
    """Shape-stable, jit-friendly wrapper: grid over batch, weights resident."""
    ln_g, ln_b, wd, bd, ws, bs, w1, b1, w2, b2 = params
    B, S, D = x.shape
    DFF = w1.shape[1]
    mask3 = mask.reshape(B, 1, S).astype(jnp.float32)

    # Fuse Q/K/V projections into a single (D, 3D) weight so the kernel does
    # one MXU matmul instead of three small ones (bit-exact vs separate).
    wqkv = jnp.concatenate([ws[0], ws[1], ws[2]], axis=1)       # (D, 3D)
    bqkv = jnp.concatenate([bs[0], bs[1], bs[2]], axis=1)       # (1, 3D)
    wo = ws[3]                                                   # (D, D)
    bo = bs[3]                                                   # (1, D)

    def full(shape):
        return pl.BlockSpec(shape, lambda b, _s=shape: (0,) * len(_s))

    return pl.pallas_call(
        _attending_layer_kernel,
        out_shape=jax.ShapeDtypeStruct((B, S, D), jnp.float32),
        grid_spec=pltpu.PrefetchScalarGridSpec(
            num_scalar_prefetch=0,
            grid=(B,),
            in_specs=[
                pl.BlockSpec((None, S, D), lambda b: (b, 0, 0)),   # x
                pl.BlockSpec((None, S, S), lambda b: (b, 0, 0)),   # eucl dists
                pl.BlockSpec((None, S, S), lambda b: (b, 0, 0)),   # graph dists
                pl.BlockSpec((None, 1, S), lambda b: (b, 0, 0)),   # mask
                full((4, 1, D)),          # LayerNorm gamma (4 sublayers)
                full((4, 1, D)),          # LayerNorm beta
                full((2, 2, D, D)),       # dist-attn weights [layer, (v,o)]
                full((2, 2, 1, D)),       # dist-attn biases
                full((D, 3 * D)),         # fused self-attn Wqkv
                full((1, 3 * D)),         # fused self-attn bqkv
                full((D, D)),             # self-attn Wo
                full((1, D)),             # self-attn bo
                full((D, DFF)),           # ff W1
                full((1, DFF)),           # ff b1
                full((DFF, D)),           # ff W2
                full((1, D)),             # ff b2
            ],
            out_specs=pl.BlockSpec((None, S, D), lambda b: (b, 0, 0)),
        ),
        compiler_params=pltpu.CompilerParams(
            dimension_semantics=("parallel",)),
    )(x, eucl_dists, graph_dists, mask3,
      ln_g, ln_b, wd, bd, wqkv, bqkv, wo, bo, w1, b1, w2, b2)


def init_params(key, d, dff):
    """Deterministic PyTorch-Linear-style uniform init (synthetic weights)."""
    ks = jax.random.split(key, 10)

    def u(k, shape, fan_in):
        b = 1.0 / np.sqrt(fan_in)
        return jax.random.uniform(k, shape, jnp.float32, -b, b)

    ln_g = 1.0 + 0.1 * jax.random.normal(ks[0], (4, 1, d), jnp.float32)
    ln_b = 0.1 * jax.random.normal(ks[1], (4, 1, d), jnp.float32)
    wd = u(ks[2], (2, 2, d, d), d)       # [eucl/graph, v/o]
    bd = u(ks[3], (2, 2, 1, d), d)
    ws = u(ks[4], (4, d, d), d)          # [q, k, v, o]
    bs = u(ks[5], (4, 1, d), d)
    w1 = u(ks[6], (d, dff), d)
    b1 = u(ks[7], (1, dff), d)
    w2 = u(ks[8], (dff, d), dff)
    b2 = u(ks[9], (1, d), dff)
    return (ln_g, ln_b, wd, bd, ws, bs, w1, b1, w2, b2)


def reference(x, eucl_dists, graph_dists, mask, params):
    """Pure-JAX reference mirroring the implemented PyTorch forward."""
    ln_g, ln_b, wd, bd, ws, bs, w1, b1, w2, b2 = params
    B, S, D = x.shape
    d_head = D // N_HEADS
    mask_bias = jnp.where(mask[:, None, :] > 0.0, 0.0, NEG_INF)  # (B, 1, S)

    def ln(z, g, b):
        mu = jnp.mean(z, axis=-1, keepdims=True)
        var = jnp.mean(jnp.square(z - mu), axis=-1, keepdims=True)
        return (z - mu) * jax.lax.rsqrt(var + EPS) * g + b

    def sm(s):
        m = jnp.max(s, axis=-1, keepdims=True)
        e = jnp.exp(s - m)
        return e / jnp.sum(e, axis=-1, keepdims=True)

    for li, dmat in enumerate((eucl_dists, graph_dists)):
        xn = ln(x, ln_g[li], ln_b[li])
        p = sm(-dmat + mask_bias)                                  # (B, S, S)
        v = xn @ wd[li, 0] + bd[li, 0]
        x = x + jnp.einsum('bqk,bkd->bqd', p, v) @ wd[li, 1] + bd[li, 1]

    xn = ln(x, ln_g[2], ln_b[2])
    q = xn @ ws[0] + bs[0]
    k = xn @ ws[1] + bs[1]
    v = xn @ ws[2] + bs[2]
    att_out = jnp.zeros_like(x)
    scale = 1.0 / float(np.sqrt(d_head))
    for h in range(N_HEADS):
        sl = slice(h * d_head, (h + 1) * d_head)
        s = jnp.einsum('bqd,bkd->bqk', q[..., sl], k[..., sl]) * scale + mask_bias
        p = sm(s)
        ah = jnp.einsum('bqk,bkd->bqd', p, v[..., sl])
        att_out = att_out + ah @ ws[3][sl, :]
    x = x + att_out + bs[3]

    xn = ln(x, ln_g[3], ln_b[3])
    x = x + jnp.maximum(xn @ w1 + b1, 0.0) @ w2 + b2
    return x


if __name__ == "__main__":
    key = jax.random.PRNGKey(0)
    kx, ke, kg, kp = jax.random.split(key, 4)

    B, S, D, DFF = 2, 8, 32, 64
    x = jax.random.normal(kx, (B, S, D), jnp.float32)
    eucl = jax.random.uniform(ke, (B, S, S), jnp.float32, 0.0, 10.0)
    eucl = 0.5 * (eucl + jnp.swapaxes(eucl, -1, -2))               # symmetric
    graph = jax.random.randint(kg, (B, S, S), 1, 6).astype(jnp.float32)
    mask = jnp.ones((B, S), jnp.float32)
    mask = mask.at[0, S - 1].set(0.0).at[1, S - 2:].set(0.0)       # padded atoms

    params = init_params(kp, D, DFF)

    out = jax.jit(attending_layer)(x, eucl, graph, mask, params)
    out = jax.block_until_ready(out)

    ref = reference(x, eucl, graph, mask, params)
    assert out.shape == ref.shape, (out.shape, ref.shape)
    np.testing.assert_allclose(np.asarray(out), np.asarray(ref),
                               rtol=1e-5, atol=1e-5)
    print("KERNEL_OK")
</pallas_src>

<mosaic_0001>
module attributes {stable_mosaic.version = 11 : i64} {
  func.func @_attending_layer_kernel(%arg0: i32, %arg1: memref<1x8x32xf32, #tpu.memory_space<vmem>>, %arg2: memref<1x8x8xf32, #tpu.memory_space<vmem>>, %arg3: memref<1x8x8xf32, #tpu.memory_space<vmem>>, %arg4: memref<1x1x8xf32, #tpu.memory_space<vmem>>, %arg5: memref<4x1x32xf32, #tpu.memory_space<vmem>>, %arg6: memref<4x1x32xf32, #tpu.memory_space<vmem>>, %arg7: memref<2x2x32x32xf32, #tpu.memory_space<vmem>>, %arg8: memref<2x2x1x32xf32, #tpu.memory_space<vmem>>, %arg9: memref<32x96xf32, #tpu.memory_space<vmem>>, %arg10: memref<1x96xf32, #tpu.memory_space<vmem>>, %arg11: memref<32x32xf32, #tpu.memory_space<vmem>>, %arg12: memref<1x32xf32, #tpu.memory_space<vmem>>, %arg13: memref<32x64xf32, #tpu.memory_space<vmem>>, %arg14: memref<1x64xf32, #tpu.memory_space<vmem>>, %arg15: memref<64x32xf32, #tpu.memory_space<vmem>>, %arg16: memref<1x32xf32, #tpu.memory_space<vmem>>, %arg17: memref<1x8x32xf32, #tpu.memory_space<vmem>>) attributes {dimension_semantics = [#tpu.dimension_semantics<parallel>], iteration_bounds = array<i64: 2>, scalar_prefetch = 0 : i64, scratch_operands = 0 : i64, tpu.core_type = #tpu.core_type<tc>, window_params = [{transform_indices = @transform_0, window_bounds = array<i64: 1, 8, 32>}, {transform_indices = @transform_1, window_bounds = array<i64: 1, 8, 8>}, {transform_indices = @transform_2, window_bounds = array<i64: 1, 8, 8>}, {transform_indices = @transform_3, window_bounds = array<i64: 1, 1, 8>}, {pipeline_mode = #tpu.pipeline_mode<synchronous>, transform_indices = @transform_4, window_bounds = array<i64: 4, 1, 32>}, {pipeline_mode = #tpu.pipeline_mode<synchronous>, transform_indices = @transform_5, window_bounds = array<i64: 4, 1, 32>}, {pipeline_mode = #tpu.pipeline_mode<synchronous>, transform_indices = @transform_6, window_bounds = array<i64: 2, 2, 32, 32>}, {pipeline_mode = #tpu.pipeline_mode<synchronous>, transform_indices = @transform_7, window_bounds = array<i64: 2, 2, 1, 32>}, {pipeline_mode = #tpu.pipeline_mode<synchronous>, transform_indices = @transform_8, window_bounds = array<i64: 32, 96>}, {pipeline_mode = #tpu.pipeline_mode<synchronous>, transform_indices = @transform_9, window_bounds = array<i64: 1, 96>}, {pipeline_mode = #tpu.pipeline_mode<synchronous>, transform_indices = @transform_10, window_bounds = array<i64: 32, 32>}, {pipeline_mode = #tpu.pipeline_mode<synchronous>, transform_indices = @transform_11, window_bounds = array<i64: 1, 32>}, {pipeline_mode = #tpu.pipeline_mode<synchronous>, transform_indices = @transform_12, window_bounds = array<i64: 32, 64>}, {pipeline_mode = #tpu.pipeline_mode<synchronous>, transform_indices = @transform_13, window_bounds = array<i64: 1, 64>}, {pipeline_mode = #tpu.pipeline_mode<synchronous>, transform_indices = @transform_14, window_bounds = array<i64: 64, 32>}, {pipeline_mode = #tpu.pipeline_mode<synchronous>, transform_indices = @transform_15, window_bounds = array<i64: 1, 32>}, {transform_indices = @transform_16, window_bounds = array<i64: 1, 8, 32>}]} {
    %c0 = arith.constant 0 : index
    %c0_0 = arith.constant 0 : index
    %c0_1 = arith.constant 0 : index
    %0 = vector.load %arg1[%c0, %c0_0, %c0_1] : memref<1x8x32xf32, #tpu.memory_space<vmem>>, vector<1x8x32xf32>
    %1 = vector.shape_cast %0 : vector<1x8x32xf32> to vector<8x32xf32>
    %c0_2 = arith.constant 0 : index
    %c0_3 = arith.constant 0 : index
    %c0_4 = arith.constant 0 : index
    %2 = vector.load %arg4[%c0_2, %c0_3, %c0_4] : memref<1x1x8xf32, #tpu.memory_space<vmem>>, vector<1x1x8xf32>
    %3 = vector.shape_cast %2 : vector<1x1x8xf32> to vector<1x8xf32>
    %cst = arith.constant 0.000000e+00 : f32
    %4 = vector.broadcast %cst : f32 to vector<1x8xf32>
    %5 = arith.cmpf ogt, %3, %4 : vector<1x8xf32>
    %cst_5 = arith.constant 0.000000e+00 : f32
    %cst_6 = arith.constant -1.000000e+09 : f32
    %6 = vector.broadcast %cst_5 : f32 to vector<1x8xf32>
    %7 = vector.broadcast %cst_6 : f32 to vector<1x8xf32>
    %8 = arith.select %5, %6, %7 : vector<1x8xi1>, vector<1x8xf32>
    %c0_7 = arith.constant 0 : index
    %c0_8 = arith.constant 0 : index
    %c0_9 = arith.constant 0 : index
    %9 = vector.load %arg2[%c0_7, %c0_8, %c0_9] : memref<1x8x8xf32, #tpu.memory_space<vmem>>, vector<1x8x8xf32>
    %10 = vector.shape_cast %9 : vector<1x8x8xf32> to vector<8x8xf32>
    %c0_10 = arith.constant 0 : index
    %c0_11 = arith.constant 0 : index
    %c0_12 = arith.constant 0 : index
    %11 = vector.load %arg3[%c0_10, %c0_11, %c0_12] : memref<1x8x8xf32, #tpu.memory_space<vmem>>, vector<1x8x8xf32>
    %12 = vector.shape_cast %11 : vector<1x8x8xf32> to vector<8x8xf32>
    %c0_13 = arith.constant 0 : index
    %c0_14 = arith.constant 0 : index
    %c0_15 = arith.constant 0 : index
    %13 = vector.load %arg5[%c0_13, %c0_14, %c0_15] : memref<4x1x32xf32, #tpu.memory_space<vmem>>, vector<1x1x32xf32>
    %14 = vector.shape_cast %13 : vector<1x1x32xf32> to vector<1x32xf32>
    %c0_16 = arith.constant 0 : index
    %c0_17 = arith.constant 0 : index
    %c0_18 = arith.constant 0 : index
    %15 = vector.load %arg6[%c0_16, %c0_17, %c0_18] : memref<4x1x32xf32, #tpu.memory_space<vmem>>, vector<1x1x32xf32>
    %16 = vector.shape_cast %15 : vector<1x1x32xf32> to vector<1x32xf32>
    %cst_19 = arith.constant dense<0.000000e+00> : vector<8xf32>
    %17 = vector.multi_reduction <add>, %1, %cst_19 [1] : vector<8x32xf32> to vector<8xf32>
    %18 = vector.shape_cast %17 : vector<8xf32> to vector<8x1xf32>
    %cst_20 = arith.constant 3.200000e+01 : f32
    %19 = vector.broadcast %cst_20 : f32 to vector<8x1xf32>
    %20 = arith.divf %18, %19 : vector<8x1xf32>
    %21 = vector.broadcast %20 : vector<8x1xf32> to vector<8x32xf32>
    %22 = arith.subf %1, %21 : vector<8x32xf32>
    %23 = arith.mulf %22, %22 : vector<8x32xf32>
    %cst_21 = arith.constant dense<0.000000e+00> : vector<8xf32>
    %24 = vector.multi_reduction <add>, %23, %cst_21 [1] : vector<8x32xf32> to vector<8xf32>
    %25 = vector.shape_cast %24 : vector<8xf32> to vector<8x1xf32>
    %cst_22 = arith.constant 3.200000e+01 : f32
    %26 = vector.broadcast %cst_22 : f32 to vector<8x1xf32>
    %27 = arith.divf %25, %26 : vector<8x1xf32>
    %28 = vector.broadcast %20 : vector<8x1xf32> to vector<8x32xf32>
    %29 = arith.subf %1, %28 : vector<8x32xf32>
    %cst_23 = arith.constant 9.99999997E-7 : f32
    %30 = vector.broadcast %cst_23 : f32 to vector<8x1xf32>
    %31 = arith.addf %27, %30 : vector<8x1xf32>
    %32 = math.rsqrt %31 : vector<8x1xf32>
    %33 = vector.broadcast %32 : vector<8x1xf32> to vector<8x32xf32>
    %34 = arith.mulf %29, %33 : vector<8x32xf32>
    %35 = vector.broadcast %14 : vector<1x32xf32> to vector<8x32xf32>
    %36 = arith.mulf %34, %35 : vector<8x32xf32>
    %37 = vector.broadcast %16 : vector<1x32xf32> to vector<8x32xf32>
    %38 = arith.addf %36, %37 : vector<8x32xf32>
    %cst_24 = arith.constant 0.000000e+00 : f32
    %39 = vector.broadcast %cst_24 : f32 to vector<8x8xf32>
    %40 = arith.subf %39, %10 : vector<8x8xf32>
    %41 = vector.broadcast %8 : vector<1x8xf32> to vector<8x8xf32>
    %42 = arith.addf %40, %41 : vector<8x8xf32>
    %cst_25 = arith.constant dense<0xFF800000> : vector<8xf32>
    %43 = vector.multi_reduction <maximumf>, %42, %cst_25 [1] : vector<8x8xf32> to vector<8xf32>
    %44 = vector.shape_cast %43 : vector<8xf32> to vector<8x1xf32>
    %45 = vector.broadcast %44 : vector<8x1xf32> to vector<8x8xf32>
    %46 = arith.subf %42, %45 : vector<8x8xf32>
    %47 = math.exp %46 : vector<8x8xf32>
    %cst_26 = arith.constant dense<0.000000e+00> : vector<8xf32>
    %48 = vector.multi_reduction <add>, %47, %cst_26 [1] : vector<8x8xf32> to vector<8xf32>
    %49 = vector.shape_cast %48 : vector<8xf32> to vector<8x1xf32>
    %50 = vector.broadcast %49 : vector<8x1xf32> to vector<8x8xf32>
    %51 = arith.divf %47, %50 : vector<8x8xf32>
    %c0_27 = arith.constant 0 : index
    %c0_28 = arith.constant 0 : index
    %c0_29 = arith.constant 0 : index
    %c0_30 = arith.constant 0 : index
    %52 = vector.load %arg7[%c0_27, %c0_28, %c0_29, %c0_30] : memref<2x2x32x32xf32, #tpu.memory_space<vmem>>, vector<1x1x32x32xf32>
    %53 = vector.shape_cast %52 : vector<1x1x32x32xf32> to vector<32x32xf32>
    %cst_31 = arith.constant dense<0.000000e+00> : vector<8x32xf32>
    %54 = tpu.matmul %38, %53, %cst_31 {dimension_numbers = #tpu.dot_dimension_numbers<[1], [0], [0], [1], [0, 0, 1, 1], [], []>} : vector<8x32xf32>, vector<32x32xf32>, vector<8x32xf32> -> vector<8x32xf32>
    %c0_32 = arith.constant 0 : index
    %c0_33 = arith.constant 0 : index
    %c0_34 = arith.constant 0 : index
    %c0_35 = arith.constant 0 : index
    %55 = vector.load %arg8[%c0_32, %c0_33, %c0_34, %c0_35] : memref<2x2x1x32xf32, #tpu.memory_space<vmem>>, vector<1x1x1x32xf32>
    %56 = vector.shape_cast %55 : vector<1x1x1x32xf32> to vector<1x32xf32>
    %57 = vector.broadcast %56 : vector<1x32xf32> to vector<8x32xf32>
    %58 = arith.addf %54, %57 : vector<8x32xf32>
    %cst_36 = arith.constant dense<0.000000e+00> : vector<8x32xf32>
    %59 = tpu.matmul %51, %58, %cst_36 {dimension_numbers = #tpu.dot_dimension_numbers<[1], [0], [0], [1], [0, 0, 1, 1], [], []>} : vector<8x8xf32>, vector<8x32xf32>, vector<8x32xf32> -> vector<8x32xf32>
    %c0_37 = arith.constant 0 : index
    %c1 = arith.constant 1 : index
    %c0_38 = arith.constant 0 : index
    %c0_39 = arith.constant 0 : index
    %60 = vector.load %arg7[%c0_37, %c1, %c0_38, %c0_39] : memref<2x2x32x32xf32, #tpu.memory_space<vmem>>, vector<1x1x32x32xf32>
    %61 = vector.shape_cast %60 : vector<1x1x32x32xf32> to vector<32x32xf32>
    %cst_40 = arith.constant dense<0.000000e+00> : vector<8x32xf32>
    %62 = tpu.matmul %59, %61, %cst_40 {dimension_numbers = #tpu.dot_dimension_numbers<[1], [0], [0], [1], [0, 0, 1, 1], [], []>} : vector<8x32xf32>, vector<32x32xf32>, vector<8x32xf32> -> vector<8x32xf32>
    %63 = arith.addf %1, %62 : vector<8x32xf32>
    %c0_41 = arith.constant 0 : index
    %c1_42 = arith.constant 1 : index
    %c0_43 = arith.constant 0 : index
    %c0_44 = arith.constant 0 : index
    %64 = vector.load %arg8[%c0_41, %c1_42, %c0_43, %c0_44] : memref<2x2x1x32xf32, #tpu.memory_space<vmem>>, vector<1x1x1x32xf32>
    %65 = vector.shape_cast %64 : vector<1x1x1x32xf32> to vector<1x32xf32>
    %66 = vector.broadcast %65 : vector<1x32xf32> to vector<8x32xf32>
    %67 = arith.addf %63, %66 : vector<8x32xf32>
    %c1_45 = arith.constant 1 : index
    %c0_46 = arith.constant 0 : index
    %c0_47 = arith.constant 0 : index
    %68 = vector.load %arg5[%c1_45, %c0_46, %c0_47] : memref<4x1x32xf32, #tpu.memory_space<vmem>>, vector<1x1x32xf32>
    %69 = vector.shape_cast %68 : vector<1x1x32xf32> to vector<1x32xf32>
    %c1_48 = arith.constant 1 : index
    %c0_49 = arith.constant 0 : index
    %c0_50 = arith.constant 0 : index
    %70 = vector.load %arg6[%c1_48, %c0_49, %c0_50] : memref<4x1x32xf32, #tpu.memory_space<vmem>>, vector<1x1x32xf32>
    %71 = vector.shape_cast %70 : vector<1x1x32xf32> to vector<1x32xf32>
    %cst_51 = arith.constant dense<0.000000e+00> : vector<8xf32>
    %72 = vector.multi_reduction <add>, %67, %cst_51 [1] : vector<8x32xf32> to vector<8xf32>
    %73 = vector.shape_cast %72 : vector<8xf32> to vector<8x1xf32>
    %cst_52 = arith.constant 3.200000e+01 : f32
    %74 = vector.broadcast %cst_52 : f32 to vector<8x1xf32>
    %75 = arith.divf %73, %74 : vector<8x1xf32>
    %76 = vector.broadcast %75 : vector<8x1xf32> to vector<8x32xf32>
    %77 = arith.subf %67, %76 : vector<8x32xf32>
    %78 = arith.mulf %77, %77 : vector<8x32xf32>
    %cst_53 = arith.constant dense<0.000000e+00> : vector<8xf32>
    %79 = vector.multi_reduction <add>, %78, %cst_53 [1] : vector<8x32xf32> to vector<8xf32>
    %80 = vector.shape_cast %79 : vector<8xf32> to vector<8x1xf32>
    %cst_54 = arith.constant 3.200000e+01 : f32
    %81 = vector.broadcast %cst_54 : f32 to vector<8x1xf32>
    %82 = arith.divf %80, %81 : vector<8x1xf32>
    %83 = vector.broadcast %75 : vector<8x1xf32> to vector<8x32xf32>
    %84 = arith.subf %67, %83 : vector<8x32xf32>
    %cst_55 = arith.constant 9.99999997E-7 : f32
    %85 = vector.broadcast %cst_55 : f32 to vector<8x1xf32>
    %86 = arith.addf %82, %85 : vector<8x1xf32>
    %87 = math.rsqrt %86 : vector<8x1xf32>
    %88 = vector.broadcast %87 : vector<8x1xf32> to vector<8x32xf32>
    %89 = arith.mulf %84, %88 : vector<8x32xf32>
    %90 = vector.broadcast %69 : vector<1x32xf32> to vector<8x32xf32>
    %91 = arith.mulf %89, %90 : vector<8x32xf32>
    %92 = vector.broadcast %71 : vector<1x32xf32> to vector<8x32xf32>
    %93 = arith.addf %91, %92 : vector<8x32xf32>
    %cst_56 = arith.constant 0.000000e+00 : f32
    %94 = vector.broadcast %cst_56 : f32 to vector<8x8xf32>
    %95 = arith.subf %94, %12 : vector<8x8xf32>
    %96 = vector.broadcast %8 : vector<1x8xf32> to vector<8x8xf32>
    %97 = arith.addf %95, %96 : vector<8x8xf32>
    %cst_57 = arith.constant dense<0xFF800000> : vector<8xf32>
    %98 = vector.multi_reduction <maximumf>, %97, %cst_57 [1] : vector<8x8xf32> to vector<8xf32>
    %99 = vector.shape_cast %98 : vector<8xf32> to vector<8x1xf32>
    %100 = vector.broadcast %99 : vector<8x1xf32> to vector<8x8xf32>
    %101 = arith.subf %97, %100 : vector<8x8xf32>
    %102 = math.exp %101 : vector<8x8xf32>
    %cst_58 = arith.constant dense<0.000000e+00> : vector<8xf32>
    %103 = vector.multi_reduction <add>, %102, %cst_58 [1] : vector<8x8xf32> to vector<8xf32>
    %104 = vector.shape_cast %103 : vector<8xf32> to vector<8x1xf32>
    %105 = vector.broadcast %104 : vector<8x1xf32> to vector<8x8xf32>
    %106 = arith.divf %102, %105 : vector<8x8xf32>
    %c1_59 = arith.constant 1 : index
    %c0_60 = arith.constant 0 : index
    %c0_61 = arith.constant 0 : index
    %c0_62 = arith.constant 0 : index
    %107 = vector.load %arg7[%c1_59, %c0_60, %c0_61, %c0_62] : memref<2x2x32x32xf32, #tpu.memory_space<vmem>>, vector<1x1x32x32xf32>
    %108 = vector.shape_cast %107 : vector<1x1x32x32xf32> to vector<32x32xf32>
    %cst_63 = arith.constant dense<0.000000e+00> : vector<8x32xf32>
    %109 = tpu.matmul %93, %108, %cst_63 {dimension_numbers = #tpu.dot_dimension_numbers<[1], [0], [0], [1], [0, 0, 1, 1], [], []>} : vector<8x32xf32>, vector<32x32xf32>, vector<8x32xf32> -> vector<8x32xf32>
    %c1_64 = arith.constant 1 : index
    %c0_65 = arith.constant 0 : index
    %c0_66 = arith.constant 0 : index
    %c0_67 = arith.constant 0 : index
    %110 = vector.load %arg8[%c1_64, %c0_65, %c0_66, %c0_67] : memref<2x2x1x32xf32, #tpu.memory_space<vmem>>, vector<1x1x1x32xf32>
    %111 = vector.shape_cast %110 : vector<1x1x1x32xf32> to vector<1x32xf32>
    %112 = vector.broadcast %111 : vector<1x32xf32> to vector<8x32xf32>
    %113 = arith.addf %109, %112 : vector<8x32xf32>
    %cst_68 = arith.constant dense<0.000000e+00> : vector<8x32xf32>
    %114 = tpu.matmul %106, %113, %cst_68 {dimension_numbers = #tpu.dot_dimension_numbers<[1], [0], [0], [1], [0, 0, 1, 1], [], []>} : vector<8x8xf32>, vector<8x32xf32>, vector<8x32xf32> -> vector<8x32xf32>
    %c1_69 = arith.constant 1 : index
    %c1_70 = arith.constant 1 : index
    %c0_71 = arith.constant 0 : index
    %c0_72 = arith.constant 0 : index
    %115 = vector.load %arg7[%c1_69, %c1_70, %c0_71, %c0_72] : memref<2x2x32x32xf32, #tpu.memory_space<vmem>>, vector<1x1x32x32xf32>
    %116 = vector.shape_cast %115 : vector<1x1x32x32xf32> to vector<32x32xf32>
    %cst_73 = arith.constant dense<0.000000e+00> : vector<8x32xf32>
    %117 = tpu.matmul %114, %116, %cst_73 {dimension_numbers = #tpu.dot_dimension_numbers<[1], [0], [0], [1], [0, 0, 1, 1], [], []>} : vector<8x32xf32>, vector<32x32xf32>, vector<8x32xf32> -> vector<8x32xf32>
    %118 = arith.addf %67, %117 : vector<8x32xf32>
    %c1_74 = arith.constant 1 : index
    %c1_75 = arith.constant 1 : index
    %c0_76 = arith.constant 0 : index
    %c0_77 = arith.constant 0 : index
    %119 = vector.load %arg8[%c1_74, %c1_75, %c0_76, %c0_77] : memref<2x2x1x32xf32, #tpu.memory_space<vmem>>, vector<1x1x1x32xf32>
    %120 = vector.shape_cast %119 : vector<1x1x1x32xf32> to vector<1x32xf32>
    %121 = vector.broadcast %120 : vector<1x32xf32> to vector<8x32xf32>
    %122 = arith.addf %118, %121 : vector<8x32xf32>
    %c2 = arith.constant 2 : index
    %c0_78 = arith.constant 0 : index
    %c0_79 = arith.constant 0 : index
    %123 = vector.load %arg5[%c2, %c0_78, %c0_79] : memref<4x1x32xf32, #tpu.memory_space<vmem>>, vector<1x1x32xf32>
    %124 = vector.shape_cast %123 : vector<1x1x32xf32> to vector<1x32xf32>
    %c2_80 = arith.constant 2 : index
    %c0_81 = arith.constant 0 : index
    %c0_82 = arith.constant 0 : index
    %125 = vector.load %arg6[%c2_80, %c0_81, %c0_82] : memref<4x1x32xf32, #tpu.memory_space<vmem>>, vector<1x1x32xf32>
    %126 = vector.shape_cast %125 : vector<1x1x32xf32> to vector<1x32xf32>
    %cst_83 = arith.constant dense<0.000000e+00> : vector<8xf32>
    %127 = vector.multi_reduction <add>, %122, %cst_83 [1] : vector<8x32xf32> to vector<8xf32>
    %128 = vector.shape_cast %127 : vector<8xf32> to vector<8x1xf32>
    %cst_84 = arith.constant 3.200000e+01 : f32
    %129 = vector.broadcast %cst_84 : f32 to vector<8x1xf32>
    %130 = arith.divf %128, %129 : vector<8x1xf32>
    %131 = vector.broadcast %130 : vector<8x1xf32> to vector<8x32xf32>
    %132 = arith.subf %122, %131 : vector<8x32xf32>
    %133 = arith.mulf %132, %132 : vector<8x32xf32>
    %cst_85 = arith.constant dense<0.000000e+00> : vector<8xf32>
    %134 = vector.multi_reduction <add>, %133, %cst_85 [1] : vector<8x32xf32> to vector<8xf32>
    %135 = vector.shape_cast %134 : vector<8xf32> to vector<8x1xf32>
    %cst_86 = arith.constant 3.200000e+01 : f32
    %136 = vector.broadcast %cst_86 : f32 to vector<8x1xf32>
    %137 = arith.divf %135, %136 : vector<8x1xf32>
    %138 = vector.broadcast %130 : vector<8x1xf32> to vector<8x32xf32>
    %139 = arith.subf %122, %138 : vector<8x32xf32>
    %cst_87 = arith.constant 9.99999997E-7 : f32
    %140 = vector.broadcast %cst_87 : f32 to vector<8x1xf32>
    %141 = arith.addf %137, %140 : vector<8x1xf32>
    %142 = math.rsqrt %141 : vector<8x1xf32>
    %143 = vector.broadcast %142 : vector<8x1xf32> to vector<8x32xf32>
    %144 = arith.mulf %139, %143 : vector<8x32xf32>
    %145 = vector.broadcast %124 : vector<1x32xf32> to vector<8x32xf32>
    %146 = arith.mulf %144, %145 : vector<8x32xf32>
    %147 = vector.broadcast %126 : vector<1x32xf32> to vector<8x32xf32>
    %148 = arith.addf %146, %147 : vector<8x32xf32>
    %c0_88 = arith.constant 0 : index
    %c0_89 = arith.constant 0 : index
    %149 = vector.load %arg9[%c0_88, %c0_89] : memref<32x96xf32, #tpu.memory_space<vmem>>, vector<32x96xf32>
    %cst_90 = arith.constant dense<0.000000e+00> : vector<8x96xf32>
    %150 = tpu.matmul %148, %149, %cst_90 {dimension_numbers = #tpu.dot_dimension_numbers<[1], [0], [0], [1], [0, 0, 1, 1], [], []>} : vector<8x32xf32>, vector<32x96xf32>, vector<8x96xf32> -> vector<8x96xf32>
    %c0_91 = arith.constant 0 : index
    %c0_92 = arith.constant 0 : index
    %151 = vector.load %arg10[%c0_91, %c0_92] : memref<1x96xf32, #tpu.memory_space<vmem>>, vector<1x96xf32>
    %152 = vector.broadcast %151 : vector<1x96xf32> to vector<8x96xf32>
    %153 = arith.addf %150, %152 : vector<8x96xf32>
    %c0_93 = arith.constant 0 : index
    %c0_94 = arith.constant 0 : index
    %154 = vector.load %arg11[%c0_93, %c0_94] : memref<32x32xf32, #tpu.memory_space<vmem>>, vector<32x32xf32>
    %cst_95 = arith.constant 0.000000e+00 : f32
    %155 = vector.broadcast %cst_95 : f32 to vector<8x32xf32>
    %156 = vector.extract_strided_slice %153 {offsets = [0, 0], sizes = [8, 8], strides = [1, 1]} : vector<8x96xf32> to vector<8x8xf32>
    %157 = vector.extract_strided_slice %153 {offsets = [0, 32], sizes = [8, 8], strides = [1, 1]} : vector<8x96xf32> to vector<8x8xf32>
    %158 = vector.extract_strided_slice %153 {offsets = [0, 64], sizes = [8, 8], strides = [1, 1]} : vector<8x96xf32> to vector<8x8xf32>
    %cst_96 = arith.constant dense<0.000000e+00> : vector<8x8xf32>
    %159 = tpu.matmul %156, %157, %cst_96 {dimension_numbers = #tpu.dot_dimension_numbers<[1], [1], [0], [0], [0, 0, 1, 0], [], []>} : vector<8x8xf32>, vector<8x8xf32>, vector<8x8xf32> -> vector<8x8xf32>
    %cst_97 = arith.constant 0.353553385 : f32
    %160 = vector.broadcast %cst_97 : f32 to vector<8x8xf32>
    %161 = arith.mulf %159, %160 : vector<8x8xf32>
    %162 = vector.broadcast %8 : vector<1x8xf32> to vector<8x8xf32>
    %163 = arith.addf %161, %162 : vector<8x8xf32>
    %cst_98 = arith.constant dense<0xFF800000> : vector<8xf32>
    %164 = vector.multi_reduction <maximumf>, %163, %cst_98 [1] : vector<8x8xf32> to vector<8xf32>
    %165 = vector.shape_cast %164 : vector<8xf32> to vector<8x1xf32>
    %166 = vector.broadcast %165 : vector<8x1xf32> to vector<8x8xf32>
    %167 = arith.subf %163, %166 : vector<8x8xf32>
    %168 = math.exp %167 : vector<8x8xf32>
    %cst_99 = arith.constant dense<0.000000e+00> : vector<8xf32>
    %169 = vector.multi_reduction <add>, %168, %cst_99 [1] : vector<8x8xf32> to vector<8xf32>
    %170 = vector.shape_cast %169 : vector<8xf32> to vector<8x1xf32>
    %171 = vector.broadcast %170 : vector<8x1xf32> to vector<8x8xf32>
    %172 = arith.divf %168, %171 : vector<8x8xf32>
    %cst_100 = arith.constant dense<0.000000e+00> : vector<8x8xf32>
    %173 = tpu.matmul %172, %158, %cst_100 {dimension_numbers = #tpu.dot_dimension_numbers<[1], [0], [0], [1], [0, 0, 1, 1], [], []>} : vector<8x8xf32>, vector<8x8xf32>, vector<8x8xf32> -> vector<8x8xf32>
    %174 = vector.extract_strided_slice %154 {offsets = [0, 0], sizes = [8, 32], strides = [1, 1]} : vector<32x32xf32> to vector<8x32xf32>
    %cst_101 = arith.constant dense<0.000000e+00> : vector<8x32xf32>
    %175 = tpu.matmul %173, %174, %cst_101 {dimension_numbers = #tpu.dot_dimension_numbers<[1], [0], [0], [1], [0, 0, 1, 1], [], []>} : vector<8x8xf32>, vector<8x32xf32>, vector<8x32xf32> -> vector<8x32xf32>
    %176 = arith.addf %155, %175 : vector<8x32xf32>
    %177 = vector.extract_strided_slice %153 {offsets = [0, 8], sizes = [8, 8], strides = [1, 1]} : vector<8x96xf32> to vector<8x8xf32>
    %178 = vector.extract_strided_slice %153 {offsets = [0, 40], sizes = [8, 8], strides = [1, 1]} : vector<8x96xf32> to vector<8x8xf32>
    %179 = vector.extract_strided_slice %153 {offsets = [0, 72], sizes = [8, 8], strides = [1, 1]} : vector<8x96xf32> to vector<8x8xf32>
    %cst_102 = arith.constant dense<0.000000e+00> : vector<8x8xf32>
    %180 = tpu.matmul %177, %178, %cst_102 {dimension_numbers = #tpu.dot_dimension_numbers<[1], [1], [0], [0], [0, 0, 1, 0], [], []>} : vector<8x8xf32>, vector<8x8xf32>, vector<8x8xf32> -> vector<8x8xf32>
    %cst_103 = arith.constant 0.353553385 : f32
    %181 = vector.broadcast %cst_103 : f32 to vector<8x8xf32>
    %182 = arith.mulf %180, %181 : vector<8x8xf32>
    %183 = vector.broadcast %8 : vector<1x8xf32> to vector<8x8xf32>
    %184 = arith.addf %182, %183 : vector<8x8xf32>
    %cst_104 = arith.constant dense<0xFF800000> : vector<8xf32>
    %185 = vector.multi_reduction <maximumf>, %184, %cst_104 [1] : vector<8x8xf32> to vector<8xf32>
    %186 = vector.shape_cast %185 : vector<8xf32> to vector<8x1xf32>
    %187 = vector.broadcast %186 : vector<8x1xf32> to vector<8x8xf32>
    %188 = arith.subf %184, %187 : vector<8x8xf32>
    %189 = math.exp %188 : vector<8x8xf32>
    %cst_105 = arith.constant dense<0.000000e+00> : vector<8xf32>
    %190 = vector.multi_reduction <add>, %189, %cst_105 [1] : vector<8x8xf32> to vector<8xf32>
    %191 = vector.shape_cast %190 : vector<8xf32> to vector<8x1xf32>
    %192 = vector.broadcast %191 : vector<8x1xf32> to vector<8x8xf32>
    %193 = arith.divf %189, %192 : vector<8x8xf32>
    %cst_106 = arith.constant dense<0.000000e+00> : vector<8x8xf32>
    %194 = tpu.matmul %193, %179, %cst_106 {dimension_numbers = #tpu.dot_dimension_numbers<[1], [0], [0], [1], [0, 0, 1, 1], [], []>} : vector<8x8xf32>, vector<8x8xf32>, vector<8x8xf32> -> vector<8x8xf32>
    %195 = vector.extract_strided_slice %154 {offsets = [8, 0], sizes = [8, 32], strides = [1, 1]} : vector<32x32xf32> to vector<8x32xf32>
    %cst_107 = arith.constant dense<0.000000e+00> : vector<8x32xf32>
    %196 = tpu.matmul %194, %195, %cst_107 {dimension_numbers = #tpu.dot_dimension_numbers<[1], [0], [0], [1], [0, 0, 1, 1], [], []>} : vector<8x8xf32>, vector<8x32xf32>, vector<8x32xf32> -> vector<8x32xf32>
    %197 = arith.addf %176, %196 : vector<8x32xf32>
    %198 = vector.extract_strided_slice %153 {offsets = [0, 16], sizes = [8, 8], strides = [1, 1]} : vector<8x96xf32> to vector<8x8xf32>
    %199 = vector.extract_strided_slice %153 {offsets = [0, 48], sizes = [8, 8], strides = [1, 1]} : vector<8x96xf32> to vector<8x8xf32>
    %200 = vector.extract_strided_slice %153 {offsets = [0, 80], sizes = [8, 8], strides = [1, 1]} : vector<8x96xf32> to vector<8x8xf32>
    %cst_108 = arith.constant dense<0.000000e+00> : vector<8x8xf32>
    %201 = tpu.matmul %198, %199, %cst_108 {dimension_numbers = #tpu.dot_dimension_numbers<[1], [1], [0], [0], [0, 0, 1, 0], [], []>} : vector<8x8xf32>, vector<8x8xf32>, vector<8x8xf32> -> vector<8x8xf32>
    %cst_109 = arith.constant 0.353553385 : f32
    %202 = vector.broadcast %cst_109 : f32 to vector<8x8xf32>
    %203 = arith.mulf %201, %202 : vector<8x8xf32>
    %204 = vector.broadcast %8 : vector<1x8xf32> to vector<8x8xf32>
    %205 = arith.addf %203, %204 : vector<8x8xf32>
    %cst_110 = arith.constant dense<0xFF800000> : vector<8xf32>
    %206 = vector.multi_reduction <maximumf>, %205, %cst_110 [1] : vector<8x8xf32> to vector<8xf32>
    %207 = vector.shape_cast %206 : vector<8xf32> to vector<8x1xf32>
    %208 = vector.broadcast %207 : vector<8x1xf32> to vector<8x8xf32>
    %209 = arith.subf %205, %208 : vector<8x8xf32>
    %210 = math.exp %209 : vector<8x8xf32>
    %cst_111 = arith.constant dense<0.000000e+00> : vector<8xf32>
    %211 = vector.multi_reduction <add>, %210, %cst_111 [1] : vector<8x8xf32> to vector<8xf32>
    %212 = vector.shape_cast %211 : vector<8xf32> to vector<8x1xf32>
    %213 = vector.broadcast %212 : vector<8x1xf32> to vector<8x8xf32>
    %214 = arith.divf %210, %213 : vector<8x8xf32>
    %cst_112 = arith.constant dense<0.000000e+00> : vector<8x8xf32>
    %215 = tpu.matmul %214, %200, %cst_112 {dimension_numbers = #tpu.dot_dimension_numbers<[1], [0], [0], [1], [0, 0, 1, 1], [], []>} : vector<8x8xf32>, vector<8x8xf32>, vector<8x8xf32> -> vector<8x8xf32>
    %216 = vector.extract_strided_slice %154 {offsets = [16, 0], sizes = [8, 32], strides = [1, 1]} : vector<32x32xf32> to vector<8x32xf32>
    %cst_113 = arith.constant dense<0.000000e+00> : vector<8x32xf32>
    %217 = tpu.matmul %215, %216, %cst_113 {dimension_numbers = #tpu.dot_dimension_numbers<[1], [0], [0], [1], [0, 0, 1, 1], [], []>} : vector<8x8xf32>, vector<8x32xf32>, vector<8x32xf32> -> vector<8x32xf32>
    %218 = arith.addf %197, %217 : vector<8x32xf32>
    %219 = vector.extract_strided_slice %153 {offsets = [0, 24], sizes = [8, 8], strides = [1, 1]} : vector<8x96xf32> to vector<8x8xf32>
    %220 = vector.extract_strided_slice %153 {offsets = [0, 56], sizes = [8, 8], strides = [1, 1]} : vector<8x96xf32> to vector<8x8xf32>
    %221 = vector.extract_strided_slice %153 {offsets = [0, 88], sizes = [8, 8], strides = [1, 1]} : vector<8x96xf32> to vector<8x8xf32>
    %cst_114 = arith.constant dense<0.000000e+00> : vector<8x8xf32>
    %222 = tpu.matmul %219, %220, %cst_114 {dimension_numbers = #tpu.dot_dimension_numbers<[1], [1], [0], [0], [0, 0, 1, 0], [], []>} : vector<8x8xf32>, vector<8x8xf32>, vector<8x8xf32> -> vector<8x8xf32>
    %cst_115 = arith.constant 0.353553385 : f32
    %223 = vector.broadcast %cst_115 : f32 to vector<8x8xf32>
    %224 = arith.mulf %222, %223 : vector<8x8xf32>
    %225 = vector.broadcast %8 : vector<1x8xf32> to vector<8x8xf32>
    %226 = arith.addf %224, %225 : vector<8x8xf32>
    %cst_116 = arith.constant dense<0xFF800000> : vector<8xf32>
    %227 = vector.multi_reduction <maximumf>, %226, %cst_116 [1] : vector<8x8xf32> to vector<8xf32>
    %228 = vector.shape_cast %227 : vector<8xf32> to vector<8x1xf32>
    %229 = vector.broadcast %228 : vector<8x1xf32> to vector<8x8xf32>
    %230 = arith.subf %226, %229 : vector<8x8xf32>
    %231 = math.exp %230 : vector<8x8xf32>
    %cst_117 = arith.constant dense<0.000000e+00> : vector<8xf32>
    %232 = vector.multi_reduction <add>, %231, %cst_117 [1] : vector<8x8xf32> to vector<8xf32>
    %233 = vector.shape_cast %232 : vector<8xf32> to vector<8x1xf32>
    %234 = vector.broadcast %233 : vector<8x1xf32> to vector<8x8xf32>
    %235 = arith.divf %231, %234 : vector<8x8xf32>
    %cst_118 = arith.constant dense<0.000000e+00> : vector<8x8xf32>
    %236 = tpu.matmul %235, %221, %cst_118 {dimension_numbers = #tpu.dot_dimension_numbers<[1], [0], [0], [1], [0, 0, 1, 1], [], []>} : vector<8x8xf32>, vector<8x8xf32>, vector<8x8xf32> -> vector<8x8xf32>
    %237 = vector.extract_strided_slice %154 {offsets = [24, 0], sizes = [8, 32], strides = [1, 1]} : vector<32x32xf32> to vector<8x32xf32>
    %cst_119 = arith.constant dense<0.000000e+00> : vector<8x32xf32>
    %238 = tpu.matmul %236, %237, %cst_119 {dimension_numbers = #tpu.dot_dimension_numbers<[1], [0], [0], [1], [0, 0, 1, 1], [], []>} : vector<8x8xf32>, vector<8x32xf32>, vector<8x32xf32> -> vector<8x32xf32>
    %239 = arith.addf %218, %238 : vector<8x32xf32>
    %240 = arith.addf %122, %239 : vector<8x32xf32>
    %c0_120 = arith.constant 0 : index
    %c0_121 = arith.constant 0 : index
    %241 = vector.load %arg12[%c0_120, %c0_121] : memref<1x32xf32, #tpu.memory_space<vmem>>, vector<1x32xf32>
    %242 = vector.broadcast %241 : vector<1x32xf32> to vector<8x32xf32>
    %243 = arith.addf %240, %242 : vector<8x32xf32>
    %c3 = arith.constant 3 : index
    %c0_122 = arith.constant 0 : index
    %c0_123 = arith.constant 0 : index
    %244 = vector.load %arg5[%c3, %c0_122, %c0_123] : memref<4x1x32xf32, #tpu.memory_space<vmem>>, vector<1x1x32xf32>
    %245 = vector.shape_cast %244 : vector<1x1x32xf32> to vector<1x32xf32>
    %c3_124 = arith.constant 3 : index
    %c0_125 = arith.constant 0 : index
    %c0_126 = arith.constant 0 : index
    %246 = vector.load %arg6[%c3_124, %c0_125, %c0_126] : memref<4x1x32xf32, #tpu.memory_space<vmem>>, vector<1x1x32xf32>
    %247 = vector.shape_cast %246 : vector<1x1x32xf32> to vector<1x32xf32>
    %cst_127 = arith.constant dense<0.000000e+00> : vector<8xf32>
    %248 = vector.multi_reduction <add>, %243, %cst_127 [1] : vector<8x32xf32> to vector<8xf32>
    %249 = vector.shape_cast %248 : vector<8xf32> to vector<8x1xf32>
    %cst_128 = arith.constant 3.200000e+01 : f32
    %250 = vector.broadcast %cst_128 : f32 to vector<8x1xf32>
    %251 = arith.divf %249, %250 : vector<8x1xf32>
    %252 = vector.broadcast %251 : vector<8x1xf32> to vector<8x32xf32>
    %253 = arith.subf %243, %252 : vector<8x32xf32>
    %254 = arith.mulf %253, %253 : vector<8x32xf32>
    %cst_129 = arith.constant dense<0.000000e+00> : vector<8xf32>
    %255 = vector.multi_reduction <add>, %254, %cst_129 [1] : vector<8x32xf32> to vector<8xf32>
    %256 = vector.shape_cast %255 : vector<8xf32> to vector<8x1xf32>
    %cst_130 = arith.constant 3.200000e+01 : f32
    %257 = vector.broadcast %cst_130 : f32 to vector<8x1xf32>
    %258 = arith.divf %256, %257 : vector<8x1xf32>
    %259 = vector.broadcast %251 : vector<8x1xf32> to vector<8x32xf32>
    %260 = arith.subf %243, %259 : vector<8x32xf32>
    %cst_131 = arith.constant 9.99999997E-7 : f32
    %261 = vector.broadcast %cst_131 : f32 to vector<8x1xf32>
    %262 = arith.addf %258, %261 : vector<8x1xf32>
    %263 = math.rsqrt %262 : vector<8x1xf32>
    %264 = vector.broadcast %263 : vector<8x1xf32> to vector<8x32xf32>
    %265 = arith.mulf %260, %264 : vector<8x32xf32>
    %266 = vector.broadcast %245 : vector<1x32xf32> to vector<8x32xf32>
    %267 = arith.mulf %265, %266 : vector<8x32xf32>
    %268 = vector.broadcast %247 : vector<1x32xf32> to vector<8x32xf32>
    %269 = arith.addf %267, %268 : vector<8x32xf32>
    %c0_132 = arith.constant 0 : index
    %c0_133 = arith.constant 0 : index
    %270 = vector.load %arg13[%c0_132, %c0_133] : memref<32x64xf32, #tpu.memory_space<vmem>>, vector<32x64xf32>
    %cst_134 = arith.constant dense<0.000000e+00> : vector<8x64xf32>
    %271 = tpu.matmul %269, %270, %cst_134 {dimension_numbers = #tpu.dot_dimension_numbers<[1], [0], [0], [1], [0, 0, 1, 1], [], []>} : vector<8x32xf32>, vector<32x64xf32>, vector<8x64xf32> -> vector<8x64xf32>
    %c0_135 = arith.constant 0 : index
    %c0_136 = arith.constant 0 : index
    %272 = vector.load %arg14[%c0_135, %c0_136] : memref<1x64xf32, #tpu.memory_space<vmem>>, vector<1x64xf32>
    %273 = vector.broadcast %272 : vector<1x64xf32> to vector<8x64xf32>
    %274 = arith.addf %271, %273 : vector<8x64xf32>
    %cst_137 = arith.constant 0.000000e+00 : f32
    %275 = vector.broadcast %cst_137 : f32 to vector<8x64xf32>
    %276 = arith.maximumf %274, %275 : vector<8x64xf32>
    %c0_138 = arith.constant 0 : index
    %c0_139 = arith.constant 0 : index
    %277 = vector.load %arg15[%c0_138, %c0_139] : memref<64x32xf32, #tpu.memory_space<vmem>>, vector<64x32xf32>
    %cst_140 = arith.constant dense<0.000000e+00> : vector<8x32xf32>
    %278 = tpu.matmul %276, %277, %cst_140 {dimension_numbers = #tpu.dot_dimension_numbers<[1], [0], [0], [1], [0, 0, 1, 1], [], []>} : vector<8x64xf32>, vector<64x32xf32>, vector<8x32xf32> -> vector<8x32xf32>
    %279 = arith.addf %243, %278 : vector<8x32xf32>
    %c0_141 = arith.constant 0 : index
    %c0_142 = arith.constant 0 : index
    %280 = vector.load %arg16[%c0_141, %c0_142] : memref<1x32xf32, #tpu.memory_space<vmem>>, vector<1x32xf32>
    %281 = vector.broadcast %280 : vector<1x32xf32> to vector<8x32xf32>
    %282 = arith.addf %279, %281 : vector<8x32xf32>
    %c0_143 = arith.constant 0 : index
    %c0_144 = arith.constant 0 : index
    %c0_145 = arith.constant 0 : index
    %283 = vector.load %arg17[%c0_143, %c0_144, %c0_145] : memref<1x8x32xf32, #tpu.memory_space<vmem>>, vector<1x8x32xf32>
    %284 = vector.shape_cast %283 : vector<1x8x32xf32> to vector<8x32xf32>
    %285 = vector.shape_cast %282 : vector<8x32xf32> to vector<1x8x32xf32>
    tpu.vector_store %arg17[%c0_143, %c0_144, %c0_145], %285 {strides = array<i32>} : memref<1x8x32xf32, #tpu.memory_space<vmem>>, vector<1x8x32xf32>,
    return
  }
  func.func @transform_0(%arg0: i32) -> (i32, i32, i32) {
    %c0_i32 = arith.constant 0 : i32
    %c0_i32_0 = arith.constant 0 : i32
    %c0_i32_1 = arith.constant 0 : i32
    return %arg0, %c0_i32, %c0_i32_0 : i32, i32, i32
  }
  func.func @transform_1(%arg0: i32) -> (i32, i32, i32) {
    %c0_i32 = arith.constant 0 : i32
    %c0_i32_0 = arith.constant 0 : i32
    %c0_i32_1 = arith.constant 0 : i32
    return %arg0, %c0_i32, %c0_i32_0 : i32, i32, i32
  }
  func.func @transform_2(%arg0: i32) -> (i32, i32, i32) {
    %c0_i32 = arith.constant 0 : i32
    %c0_i32_0 = arith.constant 0 : i32
    %c0_i32_1 = arith.constant 0 : i32
    return %arg0, %c0_i32, %c0_i32_0 : i32, i32, i32
  }
  func.func @transform_3(%arg0: i32) -> (i32, i32, i32) {
    %c0_i32 = arith.constant 0 : i32
    %c0_i32_0 = arith.constant 0 : i32
    %c0_i32_1 = arith.constant 0 : i32
    return %arg0, %c0_i32, %c0_i32_0 : i32, i32, i32
  }
  func.func @transform_4(%arg0: i32) -> (i32, i32, i32) {
    %c0_i32 = arith.constant 0 : i32
    %c0_i32_0 = arith.constant 0 : i32
    %c0_i32_1 = arith.constant 0 : i32
    %c0_i32_2 = arith.constant 0 : i32
    return %c0_i32, %c0_i32_0, %c0_i32_1 : i32, i32, i32
  }
  func.func @transform_5(%arg0: i32) -> (i32, i32, i32) {
    %c0_i32 = arith.constant 0 : i32
    %c0_i32_0 = arith.constant 0 : i32
    %c0_i32_1 = arith.constant 0 : i32
    %c0_i32_2 = arith.constant 0 : i32
    return %c0_i32, %c0_i32_0, %c0_i32_1 : i32, i32, i32
  }
  func.func @transform_6(%arg0: i32) -> (i32, i32, i32, i32) {
    %c0_i32 = arith.constant 0 : i32
    %c0_i32_0 = arith.constant 0 : i32
    %c0_i32_1 = arith.constant 0 : i32
    %c0_i32_2 = arith.constant 0 : i32
    %c0_i32_3 = arith.constant 0 : i32
    return %c0_i32, %c0_i32_0, %c0_i32_1, %c0_i32_2 : i32, i32, i32, i32
  }
  func.func @transform_7(%arg0: i32) -> (i32, i32, i32, i32) {
    %c0_i32 = arith.constant 0 : i32
    %c0_i32_0 = arith.constant 0 : i32
    %c0_i32_1 = arith.constant 0 : i32
    %c0_i32_2 = arith.constant 0 : i32
    %c0_i32_3 = arith.constant 0 : i32
    return %c0_i32, %c0_i32_0, %c0_i32_1, %c0_i32_2 : i32, i32, i32, i32
  }
  func.func @transform_8(%arg0: i32) -> (i32, i32) {
    %c0_i32 = arith.constant 0 : i32
    %c0_i32_0 = arith.constant 0 : i32
    %c0_i32_1 = arith.constant 0 : i32
    return %c0_i32, %c0_i32_0 : i32, i32
  }
  func.func @transform_9(%arg0: i32) -> (i32, i32) {
    %c0_i32 = arith.constant 0 : i32
    %c0_i32_0 = arith.constant 0 : i32
    %c0_i32_1 = arith.constant 0 : i32
    return %c0_i32, %c0_i32_0 : i32, i32
  }
  func.func @transform_10(%arg0: i32) -> (i32, i32) {
    %c0_i32 = arith.constant 0 : i32
    %c0_i32_0 = arith.constant 0 : i32
    %c0_i32_1 = arith.constant 0 : i32
    return %c0_i32, %c0_i32_0 : i32, i32
  }
  func.func @transform_11(%arg0: i32) -> (i32, i32) {
    %c0_i32 = arith.constant 0 : i32
    %c0_i32_0 = arith.constant 0 : i32
    %c0_i32_1 = arith.constant 0 : i32
    return %c0_i32, %c0_i32_0 : i32, i32
  }
  func.func @transform_12(%arg0: i32) -> (i32, i32) {
    %c0_i32 = arith.constant 0 : i32
    %c0_i32_0 = arith.constant 0 : i32
    %c0_i32_1 = arith.constant 0 : i32
    return %c0_i32, %c0_i32_0 : i32, i32
  }
  func.func @transform_13(%arg0: i32) -> (i32, i32) {
    %c0_i32 = arith.constant 0 : i32
    %c0_i32_0 = arith.constant 0 : i32
    %c0_i32_1 = arith.constant 0 : i32
    return %c0_i32, %c0_i32_0 : i32, i32
  }
  func.func @transform_14(%arg0: i32) -> (i32, i32) {
    %c0_i32 = arith.constant 0 : i32
    %c0_i32_0 = arith.constant 0 : i32
    %c0_i32_1 = arith.constant 0 : i32
    return %c0_i32, %c0_i32_0 : i32, i32
  }
  func.func @transform_15(%arg0: i32) -> (i32, i32) {
    %c0_i32 = arith.constant 0 : i32
    %c0_i32_0 = arith.constant 0 : i32
    %c0_i32_1 = arith.constant 0 : i32
    return %c0_i32, %c0_i32_0 : i32, i32
  }
  func.func @transform_16(%arg0: i32) -> (i32, i32, i32) {
    %c0_i32 = arith.constant 0 : i32
    %c0_i32_0 = arith.constant 0 : i32
    %c0_i32_1 = arith.constant 0 : i32
    return %arg0, %c0_i32, %c0_i32_0 : i32, i32, i32
  }
}

</mosaic_0001>

<bundles_post_ra>
// kernel: attending_layer.1
= control target key start
LH: loop header
LB: loop body
LE: loop exit
PB: predicated region body
PF: predicated region fallthrough
CT: control target
= control target key end

     0   :  { %s3580_s0 = inlined_call_operand.vmem [shape: f32[2,8,32], index: 0, kind: input, shape index: {}]   ;;  %s3581_s1 = inlined_call_operand.vmem [shape: f32[2,8,8], index: 1, kind: input, shape index: {}]   ;;  %s3582_s2 = inlined_call_operand.vmem [shape: f32[2,8,8], index: 2, kind: input, shape index: {}]   ;;  %s3583_s3 = inlined_call_operand.vmem [shape: f32[2,1,8], index: 3, kind: input, shape index: {}]   ;;  %s3584_s4 = inlined_call_operand.vmem [shape: f32[4,1,32], index: 4, kind: input, shape index: {}]   ;;  %s3585_s5 = inlined_call_operand.vmem [shape: f32[4,1,32], index: 5, kind: input, shape index: {}]   ;;  %s3586_s6 = inlined_call_operand.vmem [shape: f32[2,2,32,32], index: 6, kind: input, shape index: {}]   ;;  %s3587_s7 = inlined_call_operand.vmem [shape: f32[2,2,1,32], index: 7, kind: input, shape index: {}]   ;;  %s3588_s8 = inlined_call_operand.vmem [shape: f32[32,96], index: 8, kind: input, shape index: {}]   ;;  %s3589_s9 = inlined_call_operand.vmem [shape: f32[1,96], index: 9, kind: input, shape index: {}]   ;;  %s3590_s10 = inlined_call_operand.vmem [shape: f32[32,32], index: 10, kind: input, shape index: {}]   ;;  %s3591_s11 = inlined_call_operand.vmem [shape: f32[1,32], index: 11, kind: input, shape index: {}]   ;;  %s3592_s12 = inlined_call_operand.vmem [shape: f32[32,64], index: 12, kind: input, shape index: {}]   ;;  %s3593_s13 = inlined_call_operand.vmem [shape: f32[1,64], index: 13, kind: input, shape index: {}]   ;;  %s3594_s14 = inlined_call_operand.vmem [shape: f32[64,32], index: 14, kind: input, shape index: {}]   ;;  %s3595_s15 = inlined_call_operand.vmem [shape: f32[1,32], index: 15, kind: input, shape index: {}]   ;;  %s3596_s16 = inlined_call_operand.hbm [shape: f32[2,8,32], index: 16, kind: output, shape index: {}]  }
   0x1   :  { %3603 = sst [smem:[#allocation11_spill]] %s3580_s0 }
   0x2   :  { %21 = vsyncpa [#allocation3], 0 }
   0x3   :  { %23 = vsyncpa [#allocation3 + $0x1], 0  ;;  %s3156_s21 = smov 0   ;;  %s3158_s22 = smov 0  }
   0x4   :  { %s3160_s23 = smov 0   ;;  %s3162_s24 = smov 0  }
   0x5 LB: > { %3604 = sst [smem:[#allocation5_spill]] %s3041_s21  ;;  %s3177_s25 = sadd.s32 4294967295, %s3053_s24   ;;  %s3053_s24 = sphi %s3162_s24, %s3616_s24   ;;  %s3049_s23 = sphi %s3160_s23, %s3618_s23   ;;  %s3045_s22 = sphi %s3158_s22, %s3620_s22   ;;  %s3041_s21 = sphi %s3156_s21, %s3619_s21  }
   0x6   : > { %3605 = sst [smem:[#allocation6_spill]] %s3049_s23  ;;  %s2561_s26 = sadd.s32 4294967294, %s3053_s24  }
   0x7   : > { %3606 = sst [smem:[#allocation7_spill]] %s3053_s24  ;;  %s3181_s27 = sadd.s32 1, %s3053_s24  }
   0x8   : > { %3607 = sst [smem:[#allocation8_spill]] %s3181_s27  ;;  %s392_s28 = sadd.s32 1, %s3049_s23 }
   0x9   : > { %s389_s29 = ssub.s32 %s3053_s24, %s3181_s27  ;;  %p402_p0 = scmp.ne.s32.totalorder %s3049_s23, %s3045_s22 }
   0xa   : > { %p390_p1 = scmp.eq.s32.totalorder %s389_s29, 0  ;;  %p403_p2 = scmp.eq.s32.totalorder %s3177_s25, 1 }
   0xb   : > { %p408_p3 = scmp.ne.s32.totalorder %s3045_s22, %s3041_s21  ;;  %p409_p4 = scmp.eq.s32.totalorder %s2561_s26, 1 }
   0xc   : > { %s3192_s30 = scalar_select %p390_p1, %s3049_s23, %s392_s28  }
   0xd   : > { %p3194_p5 = por %p403_p2, %p402_p0  ;;  %p3198_p6 = por %p409_p4, %p408_p3 }
   0xe   : > { %3608 = sst [smem:[#allocation9_spill]] %s3192_s30  ;;  %p2564_p7 = scmp.ge.s32.totalorder %s3053_s24, 1 }
   0xf   : > { %s3610_s17 = scalar_select %p3198_p6, 1, 0 }
  0x10   : > { %p490_p8 = scmp.lt.s32.totalorder %s3053_s24, 3 }
  0x11   : > { %3611 = sst [smem:[#allocation10_spill]] %s3610_s17 }
  0x12   : > { %p491_p9 = pnand %p2564_p7, %p490_p8 }
  0x13   : > { %p550_p10 = scmp.lt.s32.totalorder (!%p491_p9), %s3177_s25, 1  ;;  %v604_v0 = vlaneseq (!%p491_p9)  ;;  %vm573_vm0 = vcmask (!%p491_p9), 261120   ;;  %s3612_s23 = sld [smem:[#allocation11_spill]] (!%p491_p9)  ;;  %v3055_v6 = vmov (!%p491_p9), -1e+09   ;;  %vm610_vm2 = vcmask (!%p491_p9), 64512  }
  0x14   : > { %494 = sbr.rel (%p491_p9) target bundleno = 6122 (0x17ea), region = 84  ;;  %v622_v23 = vld [vmem:[%s3586_s6] sm:$0xff] (!%p491_p9)  ;;  %v623_v24 = vld [vmem:[%s3586_s6 + $0x8] sm:$0xff] (!%p491_p9)  ;;  %v624_v25 = vld [vmem:[%s3586_s6 + $0x10] sm:$0xff] (!%p491_p9)  ;;  %v3056_v26 = vmov (!%p491_p9), 0.0|0.0   ;;  %vm3057_vm3 = vmmov (!%p491_p9), 0  }
  0x15   : > { %v605_v1 = vshrl.u32 (!%p491_p9), %v604_v0, 7  ;;  %2857 = vmatprep.subr.bf16.mxu0 (!%p491_p9), %v3056_v26  ;;  %v2858_v27 = vpack.c.bf16 (!%p491_p9), %v623_v24, %v622_v23  ;;  %v625_v28 = vld [vmem:[%s3586_s6 + $0x18] sm:$0xff] (!%p491_p9)  ;;  %v3058_v29 = vmov (!%p491_p9), 0.0   ;;  %v2569_v35 = vld [vmem:[%s3584_s4] ss:$0 sm:$0xff] (!%p491_p9)  ;;  %v2575_v43 = vld [vmem:[%s3586_s6 + $0x28] sm:$0xff] (!%p491_p9) }
  0x16   : > { %2710 = vmatprep.mubr.msk.f32.mxu0 (!%p491_p9), %vm3057_vm3, %v3058_v29  ;;  %2713 = vmatprep.subr.mxu1 (!%p491_p9), %v3058_v29  ;;  %v2861_v30 = vpack.c.bf16 (!%p491_p9), %v625_v28, %v624_v25  ;;  %v2570_v37 = vld [vmem:[%s3585_s5] ss:$0 sm:$0xff] (!%p491_p9)  ;;  %v2576_v50 = vld [vmem:[%s3586_s6 + $0x30] sm:$0xff] (!%p491_p9)  ;;  %v2577_v51 = vld [vmem:[%s3586_s6 + $0x38] sm:$0xff] (!%p491_p9)  ;;  %s3060_s20 = smov (!%p491_p9), 88   ;;  %s3061_s26 = smov (!%p491_p9), 64  }
  0x17   : > { %v606_v2 = vsub.s32 (!%p491_p9), 0, %v605_v1  ;;  %2715 = vmatprep.mubr.msk.f32.mxu1 (!%p491_p9), %vm3057_vm3, %v3058_v29  ;;  %2859 = vmatpush3.bf16.msra.mxu0 (!%p491_p9), %v2858_v27  ;;  %v2571_v41 = vld [vmem:[%s3587_s7] ss:$0 sm:$0xff] (!%p491_p9)  ;;  %v2867_v52 = vpack.c.bf16 (!%p491_p9), %v2577_v51, %v2576_v50  ;;  %v2580_v58 = vld [vmem:[%s3587_s7 + $0x1] ss:$0 sm:$0xff] (!%p491_p9)  ;;  %s3063_s29 = smov (!%p491_p9), 56  }
  0x18   : > { %2860 = vmatprep.subr.bf16.mxu0 (!%p491_p9), %v3056_v26  ;;  %v2574_v42 = vld [vmem:[%s3586_s6 + $0x20] sm:$0xff] (!%p491_p9)  ;;  %s3064_s21 = smov (!%p491_p9), 112   ;;  %s3066_s17 = smov (!%p491_p9), 72   ;;  %vm2371_vm4 = vcmask (!%p491_p9), 523264  }
  0x19   : > { %v2864_v48 = vpack.c.bf16 (!%p491_p9), %v2575_v43, %v2574_v42  ;;  %v2584_v24 = vld [vmem:[%s3585_s5 + $0x1] ss:$0 sm:$0xff] (!%p491_p9) }
  0x1b   : > { %s551_s18 = scalar_select %p550_p10, %s3177_s25, 1  ;;  %2862 = vmatpush3.bf16.msra.mxu0 %v2861_v30  ;;  %v2590_v30 = vld [vmem:[%s3587_s7 + $0x2] ss:$0 sm:$0xff] }
  0x1c   : > { %2869 = vmatprep.subr.bf16.mxu0 %v3056_v26 }
  0x1d   : > { %s3206_s19 = sshll.u32 %s551_s18, 3  ;;  %s564_s28 = scalar_lea.vmem %s3583_s3, %s551_s18 }
  0x1e   : > { %s553_s27 = scalar_lea.vmem %s3612_s23, %s3206_s19  ;;  %v566_v3 = vld [vmem:[%s564_s28] sm:$0x1]  ;;  %s557_s24 = scalar_lea.vmem %s3581_s1, %s3206_s19 }
  0x1f   : > { %v3219_v4 = vld [vmem:[%s553_s27] sm:$0xff]  ;;  %vm567_vm1 = vcmp.gt.f32.partialorder %v566_v3, 0.0  ;;  %s3059_s18 = smov 96   ;;  %s3062_s28 = smov 120  }
  0x20   : > { %v569_v5 = vld [vmem:[%s557_s24] sm:$0xff]  ;;  %v568_v7 = vsel %vm567_vm1, 0.0, %v3055_v6  ;;  %v574_v8 = vsel %vm573_vm0, %v3219_v4, 0.0  ;;  %s561_s24 = scalar_lea.vmem %s3582_s2, %s3206_s19  ;;  %s3065_s23 = smov 80  }
  0x21   : > { %v602_v9 = vsub.f32 0.0, %v569_v5  ;;  %v3223_v10 = vrot.slane %v568_v7, %v606_v2  ;;  %575 = vadd.xlane.f32.xlu0 %v574_v8  ;;  %v570_v55 = vld [vmem:[%s561_s24] sm:$0xff]  ;;  %s2632_s24 = sshll.u32 %s3177_s25, 7  ;;  %s3070_s25 = smov [#allocation2]  }
  0x22   : > { %v898_v56 = vsub.f32 0.0, %v570_v55  ;;  %v1189_v55 = vld [vmem:[%s3588_s8] sm:$0xff] }
  0x23   : > { %v609_v11 = vadd.f32 %v3223_v10, %v602_v9 }
  0x24   : > { %v899_v62 = vadd.f32 %v898_v56, %v3223_v10  ;;  %v1190_v56 = vld [vmem:[%s3588_s8 + $0x8] sm:$0xff] }
  0x25   : > { %v611_v12 = vsel %vm610_vm2, %v609_v11, -inf }
  0x26   : > { %612 = vmax.xlane.f32.xlu1 %v611_v12  ;;  %v900_v0 = vsel %vm610_vm2, %v899_v62, -inf  ;;  %v2585_v12 = vld [vmem:[%s3586_s6 + $0x40] sm:$0xff] }
  0xae   : > { %v576_v13 = vpop.xlane.xlu0 %575 }
  0xaf   : > { %v578_v14 = vmul.f32 0.03125, %v576_v13  ;;  %v2586_v13 = vld [vmem:[%s3586_s6 + $0x48] sm:$0xff] }
  0xb1   : > { %v579_v15 = vsub.f32 %v3219_v4, %v578_v14  ;;  %v2870_v14 = vpack.c.bf16 %v2586_v13, %v2585_v12 }
  0xb3   : > { %v580_v16 = vmul.f32 %v579_v15, %v579_v15  ;;  %v613_v17 = vpop.xlane.xlu1 %612 }
  0xb4   : > { %v614_v18 = vsub.f32 %v609_v11, %v613_v17 }
  0xb5   : > { %v581_v19 = vsel %vm573_vm0, %v580_v16, 0.0  ;;  %v2588_v16 = vld [vmem:[%s3586_s6 + $0x58] sm:$0xff] }
  0xb6   : > { %582 = vadd.xlane.f32.xlu0 %v581_v19  ;;  %v615_v20 = vmul.f32 1.442695, %v614_v18 }
  0xb8   : > { %2959 = vpow2.f32 %v615_v20 }
  0xc2   : > { %v2960_v21 = vpop.eup %2959 }
  0xc3   : > { %v617_v22 = vsel %vm610_vm2, %v2960_v21, 0.0 }
  0xc4   : > { %618 = vadd.xlane.f32.xlu1 %v617_v22  ;;  %v2583_v22 = vld [vmem:[%s3584_s4 + $0x1] ss:$0 sm:$0xff] }
 0x143   : > { %v583_v31 = vpop.xlane.xlu0 %582 }
 0x144   : > { %v584_v32 = vmul.f32 0.03125, %v583_v31  ;;  %v2593_v31 = vld [vmem:[%s3586_s6 + $0x60] sm:$0xff] }
 0x146   : > { %v585_v33 = vadd.f32 1e-06, %v584_v32  ;;  %v2594_v32 = vld [vmem:[%s3586_s6 + $0x68] sm:$0xff] }
 0x148   : > { %2961 = vrsqrt.f32 %v585_v33 }
 0x151   : > { %v619_v40 = vpop.xlane.xlu1 %618 }
 0x152   : > { %v2962_v34 = vpop.eup %2961  ;;  %2963 = vrcp.f32 %v619_v40  ;;  %v2596_v40 = vld [vmem:[%s3586_s6 + $0x78] sm:$0xff] }
 0x153   : > { %v587_v36 = vmul.f32 %v2962_v34, %v579_v15  ;;  %v2587_v15 = vld [vmem:[%s3586_s6 + $0x50] sm:$0xff] }
 0x154   : > { %v2873_v17 = vpack.c.bf16 %v2588_v16, %v2587_v15 }
 0x155   : > { %v594_v38 = vmul.f32 %v2569_v35, %v587_v36 }
 0x157   : > { %v601_v39 = vadd.f32 %v2570_v37, %v594_v38  ;;  %v2876_v37 = vpack.c.bf16 %v2594_v32, %v2593_v31 }
 0x159   : > { %2711 = vmatmul.mubr.msk.f32.vlgmr.msra.gmra.mrb[0].mxu0 %vm573_vm0, %v601_v39  ;;  %v2595_v39 = vld [vmem:[%s3586_s6 + $0x70] sm:$0xff] }
 0x15a   : > { %2737 = vmatprep.mubr.msk.f32.mxu0 %vm3057_vm3, %v3058_v29  ;;  %2871 = vmatpush3.bf16.msra.mxu0 %v2870_v14 }
 0x15b   : > { %2872 = vmatprep.subr.bf16.mxu0 %v3056_v26 }
 0x15c   : > { %v2964_v44 = vpop.eup %2963 }
 0x15d   : > { %v621_v49 = vmul.f32 %v2964_v44, %v2960_v21 }
 0x15e   : > { %2874 = vmatpush3.bf16.msra.mxu0 %v2873_v17 }
 0x15f   : > { %2881 = vmatprep.subr.bf16.mxu0 %v3056_v26 }
 0x22c   : > { %v702_v45 = vpop.f32.mrb[0].mxu0 }
 0x22d   : > { %v703_v46 = vadd.f32 %v2571_v41, %v702_v45  ;;  %v2712_v47 = vpop.f32.mrb[1].mxu0  ;;  %v2879_v41 = vpack.c.bf16 %v2596_v40, %v2595_v39  ;;  %v2599_v45 = vld [vmem:[%s3587_s7 + $0x3] ss:$0 sm:$0xff] }
 0x22f   : > { %2714 = vmatpush3.msra.mxu1 %v703_v46 }
 0x230   : > { %2716 = vmatmul.mubr.msk.f32.vlgmr.msra.gmra.mrb[0].mxu1 %vm610_vm2, %v621_v49  ;;  %2863 = vmatprep.subr.bf16.mxu1 %v3056_v26 }
 0x231   : > { %2865 = vmatpush3.bf16.msra.mxu1 %v2864_v48  ;;  %2726 = vmatprep.mubr.msk.f32.mxu1 %vm3057_vm3, %v3058_v29 }
 0x232   : > { %2866 = vmatprep.subr.bf16.mxu1 %v3056_v26 }
 0x235   : > { %2868 = vmatpush3.bf16.msra.mxu1 %v2867_v52 }
 0x236   : > { %2740 = vmatprep.subr.mxu1 %v3058_v29 }
 0x303   : > { %v775_v53 = vpop.f32.mrb[0].mxu1 }
 0x304   : > { %v2717_v54 = vpop.f32.mrb[1].mxu1  ;;  %2727 = vmatmul.mubr.msk.f32.vlgmr.msra.gmra.mrb[2].mxu1 %vm573_vm0, %v775_v53 }
 0x305   : > { %2742 = vmatprep.mubr.msk.f32.mxu1 %vm3057_vm3, %v3058_v29 }
 0x3d7   : > { %v853_v57 = vpop.f32.mrb[2].mxu1 }
 0x3d8   : > { %v857_v59 = vadd.f32 %v853_v57, %v3219_v4  ;;  %v2728_v60 = vpop.f32.mrb[3].mxu1  ;;  %v2882_v57 = vpack.c.bf16 %v1190_v56, %v1189_v55 }
 0x3da   : > { %v3291_v61 = vadd.f32 %v2580_v58, %v857_v59  ;;  %v1191_v58 = vld [vmem:[%s3588_s8 + $0x10] sm:$0xff]  ;;  %v1192_v59 = vld [vmem:[%s3588_s8 + $0x18] sm:$0xff] }
 0x3db   : > { %v2885_v60 = vpack.c.bf16 %v1192_v59, %v1191_v58 }
 0x3dc   : > { %v871_v63 = vsel %vm573_vm0, %v3291_v61, 0.0 }
 0x3dd   : > { %872 = vadd.xlane.f32.xlu0 %v871_v63 }
 0x3e1   : > { %901 = vmax.xlane.f32.xlu0 %v900_v0 }
 0x46a   : > { %v873_v1 = vpop.xlane.xlu0 %872 }
 0x46b   : > { %v874_v2 = vmul.f32 0.03125, %v873_v1  ;;  %v2602_v1 = vld [vmem:[%s3584_s4 + $0x2] ss:$0 sm:$0xff] }
 0x46d   : > { %v875_v3 = vsub.f32 %v3291_v61, %v874_v2 }
 0x46e   : > { %v902_v5 = vpop.xlane.xlu0 %901 }
 0x46f   : > { %v876_v6 = vmul.f32 %v875_v3, %v875_v3  ;;  %v903_v7 = vsub.f32 %v899_v62, %v902_v5 }
 0x471   : > { %v877_v4 = vsel %vm573_vm0, %v876_v6, 0.0  ;;  %v904_v8 = vmul.f32 1.442695, %v903_v7  ;;  %v2604_v7 = vld [vmem:[%s3589_s9] ss:$0 sm:$0xff] }
 0x472   : > { %878 = vadd.xlane.f32.xlu1 %v877_v4 }
 0x473   : > { %2965 = vpow2.f32 %v904_v8 }
 0x47d   : > { %v2966_v9 = vpop.eup %2965 }
 0x47e   : > { %v906_v11 = vsel %vm610_vm2, %v2966_v9, 0.0 }
 0x47f   : > { %907 = vadd.xlane.f32.xlu1 %v906_v11 }
 0x4ff   : > { %v879_v18 = vpop.xlane.xlu1 %878 }
 0x500   : > { %v880_v19 = vmul.f32 0.03125, %v879_v18 }
 0x502   : > { %v881_v20 = vadd.f32 1e-06, %v880_v19 }
 0x504   : > { %2967 = vrsqrt.f32 %v881_v20 }
 0x50c   : > { %v908_v28 = vpop.xlane.xlu1 %907 }
 0x50d   : > { %2969 = vrcp.f32 %v908_v28 }
 0x50e   : > { %v2968_v21 = vpop.eup %2967 }
 0x50f   : > { %v883_v23 = vmul.f32 %v2968_v21, %v875_v3  ;;  %v2603_v3 = vld [vmem:[%s3585_s5 + $0x2] ss:$0 sm:$0xff] }
 0x511   : > { %v890_v25 = vmul.f32 %v2583_v22, %v883_v23 }
 0x513   : > { %v897_v27 = vadd.f32 %v2584_v24, %v890_v25 }
 0x515   : > { %2738 = vmatmul.mubr.msk.f32.vlgmr.msra.gmra.mrb[2].mxu0 %vm573_vm0, %v897_v27 }
 0x516   : > { %2764 = vmatprep.mubr.msk.f32.mxu0 %vm3057_vm3, %v3058_v29  ;;  %2883 = vmatpush3.bf16.msra.mxu0 %v2882_v57 }
 0x517   : > { %v2970_v33 = vpop.eup %2969  ;;  %2884 = vmatprep.subr.bf16.mxu0 %v3056_v26 }
 0x518   : > { %v910_v38 = vmul.f32 %v2970_v33, %v2966_v9 }
 0x51a   : > { %2886 = vmatpush3.bf16.msra.mxu0 %v2885_v60 }
 0x51b   : > { %2782 = vmatprep.subr.mxu0 %v3058_v29 }
 0x5e8   : > { %v993_v34 = vpop.f32.mrb[2].mxu0 }
 0x5e9   : > { %v994_v35 = vadd.f32 %v2590_v30, %v993_v34  ;;  %v2739_v36 = vpop.f32.mrb[3].mxu0 }
 0x5eb   : > { %2741 = vmatpush3.msra.mxu1 %v994_v35 }
 0x5ec   : > { %2743 = vmatmul.mubr.msk.f32.vlgmr.msra.gmra.mrb[4].mxu1 %vm610_vm2, %v910_v38  ;;  %2875 = vmatprep.subr.bf16.mxu1 %v3056_v26 }
 0x5ed   : > { %2877 = vmatpush3.bf16.msra.mxu1 %v2876_v37  ;;  %2753 = vmatprep.mubr.msk.f32.mxu1 %vm3057_vm3, %v3058_v29 }
 0x5ee   : > { %2878 = vmatprep.subr.bf16.mxu1 %v3056_v26 }
 0x5f1   : > { %2880 = vmatpush3.bf16.msra.mxu1 %v2879_v41 }
 0x5f2   : > { %2767 = vmatprep.subr.mxu1 %v3058_v29 }
 0x6bf   : > { %v1066_v42 = vpop.f32.mrb[4].mxu1 }
 0x6c0   : > { %v2744_v43 = vpop.f32.mrb[5].mxu1  ;;  %2754 = vmatmul.mubr.msk.f32.vlgmr.msra.gmra.mrb[6].mxu1 %vm573_vm0, %v1066_v42 }
 0x6c1   : > { %2769 = vmatprep.mubr.msk.f32.mxu1 %vm3057_vm3, %v3058_v29  ;;  %v1274_v43 = vld [vmem:[%s3590_s10 + $0x8] sm:$0xff] }
 0x793   : > { %v1144_v44 = vpop.f32.mrb[6].mxu1 }
 0x794   : > { %v1148_v46 = vadd.f32 %v1144_v44, %v3291_v61  ;;  %v2755_v47 = vpop.f32.mrb[7].mxu1 }
 0x795   : > { %v1273_v47 = vld [vmem:[%s3590_s10] sm:$0xff] }
 0x796   : > { %v3351_v48 = vadd.f32 %v2599_v45, %v1148_v46 }
 0x798   : > { %v1162_v49 = vsel %vm573_vm0, %v3351_v48, 0.0 }
 0x799   : > { %1163 = vadd.xlane.f32.xlu0 %v1162_v49 }
 0x826   : > { %v1164_v50 = vpop.xlane.xlu0 %1163 }
 0x827   : > { %v1165_v51 = vmul.f32 0.03125, %v1164_v50 }
 0x829   : > { %v1166_v52 = vsub.f32 %v3351_v48, %v1165_v51 }
 0x82b   : > { %v1167_v53 = vmul.f32 %v1166_v52, %v1166_v52 }
 0x82d   : > { %v1168_v54 = vsel %vm573_vm0, %v1167_v53, 0.0 }
 0x82e   : > { %1169 = vadd.xlane.f32.xlu1 %v1168_v54 }
 0x8bb   : > { %v1170_v61 = vpop.xlane.xlu1 %1169 }
 0x8bc   : > { %v1171_v62 = vmul.f32 0.03125, %v1170_v61 }
 0x8be   : > { %v1172_v63 = vadd.f32 1e-06, %v1171_v62 }
 0x8c0   : > { %2971 = vrsqrt.f32 %v1172_v63 }
 0x8ca   : > { %v2972_v0 = vpop.eup %2971 }
 0x8cb   : > { %v1174_v2 = vmul.f32 %v2972_v0, %v1166_v52 }
 0x8cd   : > { %v1181_v5 = vmul.f32 %v2602_v1, %v1174_v2 }
 0x8cf   : > { %v1188_v6 = vadd.f32 %v2603_v3, %v1181_v5 }
 0x8d1   : > { %2765 = vmatmul.mubr.msk.f32.vlgmr.msra.gmra.mrb[4].mxu0 %vm573_vm0, %v1188_v6 }
 0x8d2   : > { %2784 = vmatprep.mubr.msk.f32.mxu0 %vm3057_vm3, %v3058_v29 }
 0x9a4   : > { %v1269_v4 = vpop.f32.mrb[4].mxu0 }
 0x9a5   : > { %v3383_v8 = vadd.f32 %v2604_v7, %v1269_v4  ;;  %v2766_v9 = vpop.f32.mrb[5].mxu0 }
 0x9a7   : > { %1278 = vrot.lane.b32.xlu0 %v3383_v8, %s3059_s18  ;;  %s3067_s18 = smov 104  }
 0x9ab   : > { %1445 = vrot.lane.b32.xlu0 %v3383_v8, %s3060_s20  ;;  %s3068_s20 = smov 48  }
 0xa19   : > { %v1279_v11 = vpop.permute.xlu0 %1278 }
 0xa1a   : > { %2768 = vmatpush3.xpose.msk.msra.mxu1 %vm610_vm2, %v1279_v11 }
 0xa1b   : > { %2772 = vmatprep.subr.mxu1 %v3058_v29 }
 0xa1d   : > { %2770 = vmatmul.mubr.msk.f32.vlgmr.msra.gmra.mrb[8].mxu1 %vm610_vm2, %v3383_v8  ;;  %v1446_v27 = vpop.permute.xlu0 %1445 }
 0xa1e   : > { %2774 = vmatprep.mubr.msk.f32.mxu1 %vm3057_vm3, %v3058_v29 }
 0xaf0   : > { %v1350_v12 = vpop.f32.mrb[8].mxu1 }
 0xaf1   : > { %v1354_v13 = vmul.f32 0.35355338, %v1350_v12  ;;  %v2771_v14 = vpop.f32.mrb[9].mxu1  ;;  %v1275_v12 = vld [vmem:[%s3590_s10 + $0x10] sm:$0xff] }
 0xaf3   : > { %v1355_v15 = vadd.f32 %v1354_v13, %v3223_v10 }
 0xaf5   : > { %v1356_v16 = vsel %vm610_vm2, %v1355_v15, -inf }
 0xaf6   : > { %1357 = vmax.xlane.f32.xlu1 %v1356_v16 }
 0xb07   : > { %1367 = vrot.lane.b32.xlu1 %v3383_v8, %s3061_s26 }
 0xb83   : > { %v1358_v17 = vpop.xlane.xlu1 %1357 }
 0xb84   : > { %v1359_v18 = vsub.f32 %v1355_v15, %v1358_v17 }
 0xb86   : > { %v1360_v19 = vmul.f32 1.442695, %v1359_v18 }
 0xb87   : > { %v1368_v20 = vpop.permute.xlu1 %1367 }
 0xb88   : > { %2973 = vpow2.f32 %v1360_v19  ;;  %2773 = vmatpush3.msra.mxu1 %v1368_v20 }
 0xb89   : > { %2777 = vmatprep.subr.mxu1 %v3058_v29 }
 0xb92   : > { %v2974_v21 = vpop.eup %2973 }
 0xb93   : > { %v1362_v22 = vsel %vm610_vm2, %v2974_v21, 0.0 }
 0xb94   : > { %1363 = vadd.xlane.f32.xlu1 %v1362_v22 }
 0xba5   : > { %1443 = vrot.lane.b32.xlu1 %v3383_v8, %s3062_s28  ;;  %s547_s28 = sand.u32 1, %s3045_s22  }
 0xc21   : > { %v1364_v23 = vpop.xlane.xlu1 %1363 }
 0xc22   : > { %2975 = vrcp.f32 %v1364_v23 }
 0xc25   : > { %v1444_v28 = vpop.permute.xlu1 %1443 }
 0xc2c   : > { %v2976_v24 = vpop.eup %2975 }
 0xc2d   : > { %v1366_v25 = vmul.f32 %v2976_v24, %v2974_v21 }
 0xc2f   : > { %2775 = vmatmul.mubr.msk.f32.vlgmr.msra.gmra.mrb[10].mxu1 %vm610_vm2, %v1366_v25 }
 0xc30   : > { %2778 = vmatpush3.xpose.msk.msra.mxu1 %vm610_vm2, %v1446_v27  ;;  %2779 = vmatprep.mubr.msk.f32.mxu1 %vm3057_vm3, %v3058_v29 }
 0xc31   : > { %2787 = vmatprep.subr.mxu1 %v3058_v29 }
 0xc33   : > { %2780 = vmatmul.mubr.msk.f32.vlgmr.msra.gmra.mrb[12].mxu1 %vm610_vm2, %v1444_v28 }
 0xc34   : > { %2789 = vmatprep.mubr.msk.f32.mxu1 %vm3057_vm3, %v3058_v29  ;;  %2788 = vmatpush3.msra.mxu1 %v1274_v43 }
 0xc35   : > { %2797 = vmatprep.subr.mxu1 %v3058_v29 }
 0xd02   : > { %v1439_v30 = vpop.f32.mrb[10].mxu1 }
 0xd03   : > { %v2776_v31 = vpop.f32.mrb[11].mxu1 }
 0xd06   : > { %v1517_v32 = vpop.f32.mrb[12].mxu1 }
 0xd07   : > { %v1521_v33 = vmul.f32 0.35355338, %v1517_v32  ;;  %v2781_v34 = vpop.f32.mrb[13].mxu1 }
 0xd09   : > { %v1522_v35 = vadd.f32 %v1521_v33, %v3223_v10 }
 0xd0b   : > { %v1523_v36 = vsel %vm610_vm2, %v1522_v35, -inf }
 0xd0c   : > { %1524 = vmax.xlane.f32.xlu0 %v1523_v36 }
 0xd22   : > { %1534 = vrot.lane.b32.xlu0 %v3383_v8, %s3063_s29  ;;  %s3069_s29 = smov 40  }
 0xd26   : > { %1756 = vrot.lane.b32.xlu0 %v3383_v8, %s3064_s21 }
 0xd99   : > { %v1525_v37 = vpop.xlane.xlu0 %1524 }
 0xd9a   : > { %v1526_v38 = vsub.f32 %v1522_v35, %v1525_v37 }
 0xd9c   : > { %v1527_v39 = vmul.f32 1.442695, %v1526_v38  ;;  %v2622_v38 = vld [vmem:[%s3591_s11] ss:$0 sm:$0xff] }
 0xd9d   : > { %v1535_v40 = vpop.permute.xlu0 %1534 }
 0xd9e   : > { %2977 = vpow2.f32 %v1527_v39  ;;  %2783 = vmatpush3.msra.mxu0 %v1535_v40 }
 0xd9f   : > { %2792 = vmatprep.subr.mxu0 %v3058_v29 }
 0xda1   : > { %v1757_v52 = vpop.permute.xlu0 %1756 }
 0xda8   : > { %v2978_v41 = vpop.eup %2977 }
 0xda9   : > { %v1529_v42 = vsel %vm610_vm2, %v2978_v41, 0.0 }
 0xdaa   : > { %1530 = vadd.xlane.f32.xlu1 %v1529_v42 }
 0xdbb   : > { %1758 = vrot.lane.b32.xlu1 %v3383_v8, %s3065_s23 }
 0xe37   : > { %v1531_v44 = vpop.xlane.xlu1 %1530 }
 0xe38   : > { %2979 = vrcp.f32 %v1531_v44 }
 0xe3b   : > { %v1759_v50 = vpop.permute.xlu1 %1758 }
 0xe42   : > { %v2980_v45 = vpop.eup %2979 }
 0xe43   : > { %v1533_v46 = vmul.f32 %v2980_v45, %v2978_v41 }
 0xe45   : > { %2785 = vmatmul.mubr.msk.f32.vlgmr.msra.gmra.mrb[6].mxu0 %vm610_vm2, %v1533_v46 }
 0xe46   : > { %2793 = vmatpush3.msra.mxu0 %v1273_v47  ;;  %2794 = vmatprep.mubr.msk.f32.mxu0 %vm3057_vm3, %v3058_v29  ;;  %v2279_v47 = vld [vmem:[%s3592_s12 + $0x8] sm:$0xff] }
 0xe47   : > { %2802 = vmatprep.subr.mxu0 %v3058_v29 }
 0xe49   : > { %2795 = vmatmul.mubr.msk.f32.vlgmr.msra.gmra.mrb[8].mxu0 %vm610_vm2, %v1439_v30 }
 0xe4a   : > { %2804 = vmatprep.mubr.msk.f32.mxu0 %vm3057_vm3, %v3058_v29 }
 0xf18   : > { %v1606_v49 = vpop.f32.mrb[6].mxu0 }
 0xf19   : > { %v2786_v51 = vpop.f32.mrb[7].mxu0  ;;  %2790 = vmatmul.mubr.msk.f32.vlgmr.msra.gmra.mrb[14].mxu1 %vm610_vm2, %v1606_v49  ;;  %v2280_v49 = vld [vmem:[%s3592_s12 + $0x10] sm:$0xff] }
 0xf1a   : > { %2798 = vmatpush3.xpose.msk.msra.mxu1 %vm610_vm2, %v1759_v50  ;;  %2799 = vmatprep.mubr.msk.f32.mxu1 %vm3057_vm3, %v3058_v29  ;;  %v2281_v50 = vld [vmem:[%s3592_s12 + $0x18] sm:$0xff] }
 0xf1b   : > { %2807 = vmatprep.subr.mxu1 %v3058_v29  ;;  %v2891_v51 = vpack.c.bf16 %v2281_v50, %v2280_v49 }
 0xf1c   : > { %v1752_v53 = vpop.f32.mrb[8].mxu0 }
 0xf1d   : > { %v2796_v54 = vpop.f32.mrb[9].mxu0  ;;  %2800 = vmatmul.mubr.msk.f32.vlgmr.msra.gmra.mrb[16].mxu1 %vm610_vm2, %v1757_v52  ;;  %v2363_v52 = vld [vmem:[%s3594_s14] sm:$0xff] }
 0xf1e   : > { %2809 = vmatprep.mubr.msk.f32.mxu1 %vm3057_vm3, %v3058_v29  ;;  %2808 = vmatpush3.msra.mxu1 %v1275_v12  ;;  %v2365_v54 = vld [vmem:[%s3594_s14 + $0x10] sm:$0xff] }
 0xf1f   : > { %2817 = vmatprep.subr.mxu1 %v3058_v29 }
 0xfec   : > { %v1679_v55 = vpop.f32.mrb[14].mxu1 }
 0xfed   : > { %v1753_v56 = vadd.f32 %v1752_v53, %v1679_v55  ;;  %v2791_v57 = vpop.f32.mrb[15].mxu1  ;;  %v2364_v53 = vld [vmem:[%s3594_s14 + $0x8] sm:$0xff] }
 0xfee   : > { %v2894_v55 = vpack.c.bf16 %v2364_v53, %v2363_v52 }
 0xff0   : > { %v1830_v58 = vpop.f32.mrb[16].mxu1 }
 0xff1   : > { %v1834_v59 = vmul.f32 0.35355338, %v1830_v58  ;;  %v2801_v60 = vpop.f32.mrb[17].mxu1  ;;  %v2367_v58 = vld [vmem:[%s3594_s14 + $0x20] sm:$0xff] }
 0xff3   : > { %v1835_v61 = vadd.f32 %v1834_v59, %v3223_v10  ;;  %v2368_v59 = vld [vmem:[%s3594_s14 + $0x28] sm:$0xff] }
 0xff4   : > { %v2900_v60 = vpack.c.bf16 %v2368_v59, %v2367_v58 }
 0xff5   : > { %v1836_v62 = vsel %vm610_vm2, %v1835_v61, -inf }
 0xff6   : > { %1837 = vmax.xlane.f32.xlu1 %v1836_v62 }
0x1007   : > { %1999 = vrot.lane.b32.xlu1 %v3383_v8, %s3066_s17 }
0x100b   : > { %1997 = vrot.lane.b32.xlu1 %v3383_v8, %s3067_s18  ;;  %s3537_s18 = scalar_lea.hbm %s3596_s16, %s2632_s24 }
0x1083   : > { %v1838_v63 = vpop.xlane.xlu1 %1837 }
0x1084   : > { %v1839_v0 = vsub.f32 %v1835_v61, %v1838_v63 }
0x1086   : > { %v1840_v1 = vmul.f32 1.442695, %v1839_v0 }
0x1087   : > { %v2000_v4 = vpop.permute.xlu1 %1999 }
0x1088   : > { %2981 = vpow2.f32 %v1840_v1  ;;  %v2625_v1 = vld [vmem:[%s3584_s4 + $0x3] ss:$0 sm:$0xff] }
0x108b   : > { %v1998_v11 = vpop.permute.xlu1 %1997 }
0x1092   : > { %v2982_v2 = vpop.eup %2981 }
0x1093   : > { %v1842_v3 = vsel %vm610_vm2, %v2982_v2, 0.0 }
0x1094   : > { %1843 = vadd.xlane.f32.xlu0 %v1842_v3  ;;  %v2626_v3 = vld [vmem:[%s3585_s5 + $0x3] ss:$0 sm:$0xff] }
0x10aa   : > { %1847 = vrot.lane.b32.xlu0 %v3383_v8, %s3068_s20  ;;  %s2456_s20 = scalar_lea.sflag [#allocation3], %s547_s28 }
0x1121   : > { %v1844_v5 = vpop.xlane.xlu0 %1843 }
0x1122   : > { %2983 = vrcp.f32 %v1844_v5 }
0x1125   : > { %v1848_v6 = vpop.permute.xlu0 %1847 }
0x1126   : > { %2803 = vmatpush3.msra.mxu0 %v1848_v6 }
0x1127   : > { %2812 = vmatprep.subr.mxu0 %v3058_v29 }
0x112c   : > { %v2984_v7 = vpop.eup %2983 }
0x112d   : > { %v1846_v9 = vmul.f32 %v2984_v7, %v2982_v2  ;;  %v2370_v7 = vld [vmem:[%s3594_s14 + $0x38] sm:$0xff] }
0x112f   : > { %2805 = vmatmul.mubr.msk.f32.vlgmr.msra.gmra.mrb[10].mxu0 %vm610_vm2, %v1846_v9  ;;  %v2627_v9 = vld [vmem:[%s3593_s13] ss:$0 sm:$0xff] }
0x1130   : > { %2813 = vmatpush3.xpose.msk.msra.mxu0 %vm610_vm2, %v2000_v4  ;;  %2814 = vmatprep.mubr.msk.f32.mxu0 %vm3057_vm3, %v3058_v29 }
0x1131   : > { %2822 = vmatprep.subr.mxu0 %v3058_v29 }
0x1133   : > { %2815 = vmatmul.mubr.msk.f32.vlgmr.msra.gmra.mrb[12].mxu0 %vm610_vm2, %v1998_v11 }
0x1134   : > { %2824 = vmatprep.mubr.msk.f32.mxu0 %vm3057_vm3, %v3058_v29 }
0x1202   : > { %v1919_v13 = vpop.f32.mrb[10].mxu0 }
0x1203   : > { %v2806_v14 = vpop.f32.mrb[11].mxu0  ;;  %2810 = vmatmul.mubr.msk.f32.vlgmr.msra.gmra.mrb[18].mxu1 %vm610_vm2, %v1919_v13 }
0x1204   : > { %2819 = vmatprep.mubr.msk.f32.mxu1 %vm3057_vm3, %v3058_v29 }
0x1206   : > { %v2071_v15 = vpop.f32.mrb[12].mxu0 }
0x1207   : > { %v2075_v16 = vmul.f32 0.35355338, %v2071_v15  ;;  %v2816_v17 = vpop.f32.mrb[13].mxu0 }
0x1209   : > { %v2076_v18 = vadd.f32 %v2075_v16, %v3223_v10  ;;  %v2630_v16 = vld [vmem:[%s3595_s15] ss:$0 sm:$0xff] }
0x120b   : > { %v2077_v19 = vsel %vm610_vm2, %v2076_v18, -inf }
0x120c   : > { %2078 = vmax.xlane.f32.xlu0 %v2077_v19 }
0x1222   : > { %2088 = vrot.lane.b32.xlu0 %v3383_v8, %s3069_s29  ;;  %v1276_v8 = vld [vmem:[%s3590_s10 + $0x18] sm:$0xff]  ;;  %s2565_s29 = sshll.u32 %s547_s28, 3 }
0x1223   : > { %2823 = vmatpush3.msra.mxu0 %v1276_v8  ;;  %s549_s27 = scalar_lea.vmem [#allocation2], %s2565_s29  ;;  %s2995_s29 = sshll.u32 %s3070_s25, 4  ;;  %s2996_s29 = int_to_ptr.vmem [resolvable:$false] %s2995_s29 }
0x1224   : > { %2893 = vmatprep.subr.bf16.mxu0 %v3056_v26  ;;  %s2469_s30 = sshll.u32 %s549_s27, 4  ;;  %s2997_s21 = scalar_lea.vmem %s2996_s29, 256  ;;  %s3539_s30 = int_to_ptr.vmem [resolvable:$true] %s2469_s30 }
0x1225   : > { %s2991_s26 = scalar_lea.vmem %s3539_s30, 128  ;;  %p2998_p0 = scmp.lt.s32.totalorder %s3539_s30, %s2996_s29 }
0x1226   : > { %p2992_p11 = scmp.ne.s32.totalorder %s3539_s30, %s2991_s26  ;;  %p2999_p1 = scmp.lt.s32.totalorder %s2997_s21, %s2991_s26 }
0x1228   : > { %p2993_p12 = pnand %p2992_p11, %p3194_p5  ;;  %p3000_p2 = por %p2999_p1, %p2998_p0 }
0x122a   : > { %p2994_p13 = pneg %p2993_p12 }
0x122c   : > { %p3001_p3 = pnand %p3000_p2, %p2994_p13 }
0x1299   : > { %v2079_v20 = vpop.xlane.xlu0 %2078 }
0x129a   : > { %v2080_v21 = vsub.f32 %v2076_v18, %v2079_v20 }
0x129c   : > { %v2081_v22 = vmul.f32 1.442695, %v2080_v21 }
0x129d   : > { %v2089_v23 = vpop.permute.xlu0 %2088 }
0x129e   : > { %2985 = vpow2.f32 %v2081_v22  ;;  %2818 = vmatpush3.msra.mxu1 %v2089_v23 }
0x129f   : > { %2887 = vmatprep.subr.bf16.mxu1 %v3056_v26 }
0x12a8   : > { %v2986_v24 = vpop.eup %2985 }
0x12a9   : > { %v2083_v25 = vsel %vm610_vm2, %v2986_v24, 0.0 }
0x12aa   : > { %2084 = vadd.xlane.f32.xlu1 %v2083_v25 }
0x12d6   : > { %v1992_v27 = vpop.f32.mrb[18].mxu1 }
0x12d7   : > { %v1996_v10 = vadd.f32 %v1992_v27, %v1753_v56  ;;  %v2811_v28 = vpop.f32.mrb[19].mxu1  ;;  %v2366_v56 = vld [vmem:[%s3594_s14 + $0x18] sm:$0xff] }
0x12d8   : > { %v2897_v57 = vpack.c.bf16 %v2366_v56, %v2365_v54 }
0x1337   : > { %v2085_v30 = vpop.xlane.xlu1 %2084 }
0x1338   : > { %2987 = vrcp.f32 %v2085_v30 }
0x1342   : > { %v2988_v31 = vpop.eup %2987 }
0x1343   : > { %v2087_v32 = vmul.f32 %v2988_v31, %v2986_v24 }
0x1345   : > { %2820 = vmatmul.mubr.msk.f32.vlgmr.msra.gmra.mrb[20].mxu1 %vm610_vm2, %v2087_v32 }
0x1346   : > { %2835 = vmatprep.mubr.msk.f32.mxu1 %vm3057_vm3, %v3058_v29 }
0x1418   : > { %v2160_v33 = vpop.f32.mrb[20].mxu1 }
0x1419   : > { %v2821_v34 = vpop.f32.mrb[21].mxu1  ;;  %2825 = vmatmul.mubr.msk.f32.vlgmr.msra.gmra.mrb[14].mxu0 %vm610_vm2, %v2160_v33 }
0x141a   : > { %2854 = vmatprep.mubr.msk.f32.mxu0 %vm3057_vm3, %v3058_v29  ;;  %v2278_v29 = vld [vmem:[%s3592_s12] sm:$0xff]  ;;  %2895 = vmatpush3.bf16.msra.mxu0 %v2894_v55 }
0x141b   : > { %2896 = vmatprep.subr.bf16.mxu0 %v3056_v26 }
0x141e   : > { %2898 = vmatpush3.bf16.msra.mxu0 %v2897_v57 }
0x141f   : > { %2899 = vmatprep.subr.bf16.mxu0 %v3056_v26 }
0x1422   : > { %2901 = vmatpush3.bf16.msra.mxu0 %v2900_v60 }
0x1423   : > { %2902 = vmatprep.subr.bf16.mxu0 %v3056_v26 }
0x14ec   : > { %v2233_v35 = vpop.f32.mrb[14].mxu0 }
0x14ed   : > { %v2237_v36 = vadd.f32 %v2233_v35, %v1996_v10  ;;  %v2826_v37 = vpop.f32.mrb[15].mxu0 }
0x14ef   : > { %v2238_v39 = vadd.f32 %v2237_v36, %v3351_v48  ;;  %v2888_v48 = vpack.c.bf16 %v2279_v47, %v2278_v29 }
0x14f1   : > { %v2246_v40 = vadd.f32 %v2622_v38, %v2238_v39  ;;  %2889 = vmatpush3.bf16.msra.mxu1 %v2888_v48 }
0x14f2   : > { %2890 = vmatprep.subr.bf16.mxu1 %v3056_v26  ;;  %v2369_v26 = vld [vmem:[%s3594_s14 + $0x30] sm:$0xff] }
0x14f3   : > { %v2251_v41 = vsel %vm573_vm0, %v2246_v40, 0.0  ;;  %v2903_v4 = vpack.c.bf16 %v2370_v7, %v2369_v26 }
0x14f4   : > { %2252 = vadd.xlane.f32.xlu1 %v2251_v41 }
0x14f5   : > { %2892 = vmatpush3.bf16.msra.mxu1 %v2891_v51  ;;  %2904 = vmatpush3.bf16.msra.mxu0 %v2903_v4 }
0x1581   : > { %v2253_v42 = vpop.xlane.xlu1 %2252 }
0x1582   : > { %v2254_v43 = vmul.f32 0.03125, %v2253_v42 }
0x1584   : > { %v2255_v44 = vsub.f32 %v2246_v40, %v2254_v43 }
0x1586   : > { %v2256_v45 = vmul.f32 %v2255_v44, %v2255_v44 }
0x1588   : > { %v2257_v46 = vsel %vm573_vm0, %v2256_v45, 0.0 }
0x1589   : > { %2258 = vadd.xlane.f32.xlu1 %v2257_v46 }
0x1616   : > { %v2259_v61 = vpop.xlane.xlu1 %2258 }
0x1617   : > { %v2260_v62 = vmul.f32 0.03125, %v2259_v61 }
0x1619   : > { %v2261_v63 = vadd.f32 1e-06, %v2260_v62 }
0x161b   : > { %2989 = vrsqrt.f32 %v2261_v63 }
0x1625   : > { %v2990_v0 = vpop.eup %2989 }
0x1626   : > { %v2263_v2 = vmul.f32 %v2990_v0, %v2255_v44 }
0x1628   : > { %v2270_v5 = vmul.f32 %v2625_v1, %v2263_v2 }
0x162a   : > { %v2277_v6 = vadd.f32 %v2626_v3, %v2270_v5 }
0x162c   : > { %2836 = vmatmul.mubr.msk.f32.vlgmr.msra.gmra.mrb[22].mxu1 %vm573_vm0, %v2277_v6 }
0x16ff   : > { %v2358_v11 = vpop.f32.mrb[22].mxu1 }
0x1700   : > { %v2359_v12 = vadd.f32 %v2627_v9, %v2358_v11  ;;  %v2837_v13 = vpop.f32.mrb[23].mxu1 }
0x1702   : > { %v2362_v14 = vmax.f32 %v2359_v12, 0.0 }
0x1704   : > { %2855 = vmatmul.mubr.msk.f32.vlgmr.msra.gmra.mrb[16].mxu0 %vm2371_vm4, %v2362_v14 }
0x17d7   : > { %v2441_v15 = vpop.f32.mrb[16].mxu0 }
0x17d8   : > { %v2445_v17 = vadd.f32 %v2441_v15, %v2246_v40  ;;  %v2856_v18 = vpop.f32.mrb[17].mxu0 }
0x17da   : > { %v2453_v19 = vadd.f32 %v2630_v16, %v2445_v17 }
0x17dc   : > { %2454 = vst.msk [vmem:[%s549_s27] sm:$0xff] %vm573_vm0, %v2453_v19 }
0x17dd   : > { %3004 = shalt.err (!%p3001_p3)
}
0x17de   : > { %s3005_s28 = scalar_lea.hbm %s3537_s18, 128  ;;  %s3009_s27 = scalar_lea.hbm %s3596_s16, 256 }
0x17df   : > { %p3006_p4 = scmp.ne.s32.totalorder %s3537_s18, %s3005_s28  ;;  %p3010_p9 = scmp.lt.u32.totalorder %s3537_s18, %s3596_s16 }
0x17e0   : > { %p3011_p10 = scmp.lt.u32.totalorder %s3009_s27, %s3005_s28  ;;  %p3013_p12 = scmp.lt.u32.totalorder %s3005_s28, %s3537_s18 }
0x17e1   : > { %p3007_p7 = pnand %p3006_p4, %p3194_p5 }
0x17e2   : > { %p3012_p11 = por %p3011_p10, %p3010_p9 }
0x17e3   : > { %p3008_p8 = pneg %p3007_p7 }
0x17e4   : > { %p3014_p13 = por %p3013_p12, %p3012_p11 }
0x17e6   : > { %p3015_p0 = pnand %p3014_p13, %p3008_p8 }
0x17e8   : > { %3018 = shalt.err (!%p3015_p0)
}
0x17e9   : > { %2905 = dma.vmem_to_hbm [thread:$0]  (%p3194_p5), %s3539_s30, 128, %s3537_s18, %s2456_s20  }
0x17ea PF: > { %s3613_s26 = sld [smem:[#allocation7_spill]]  ;;  %s3614_s25 = sld [smem:[#allocation5_spill]] }
0x17f0   : > { %p2911_p1 = scmp.ge.s32.totalorder %s3613_s26, 2  ;;  %s2481_s21 = sand.u32 1, %s3614_s25  }
0x17f1   : > { %s2482_s23 = scalar_lea.sflag [#allocation3], %s2481_s21 }
0x17f2   : > { %p2908_p2 = pnand %p2911_p1, %p3198_p6 }
0x17f4   : > { %3036 = dma.done.wait (!%p2908_p2), %s2482_s23, 128  }
0x17f5   : > { %3038 = vsyncadd (!%p2908_p2), %s2482_s23, 4294967168  ;;  %s3616_s24 = sld [smem:[#allocation8_spill]]  ;;  %s3617_s28 = sld [smem:[#allocation6_spill]] }
0x17f6   : > { %s3618_s23 = sld [smem:[#allocation9_spill]]  ;;  %s3619_s21 = smov %s3045_s22 }
0x17fb   : > { %p26_p3 = scmp.ge.s32.totalorder %s3616_s24, 4   ;;  %s3620_s22 = smov %s3617_s28 }
0x17fd   :  { %28 = sbr.rel (!%p26_p3) target bundleno = 5 (0x5), region = 140 }
0x1804   :  { %2487 = vsyncpa [#allocation3], 1 }
0x1805   :  { %2489 = vsyncpa [#allocation3 + $0x1], 1 }

</bundles_post_ra>
